<compile_context>
chip_gen: v7x
topology: tpu7x:2x2x1
jax: 0.10.0
libtpu: 0.0.40
codegen_flags: <defaults>
</compile_context>

<pallas_src>
import functools
import math

import jax
import jax.numpy as jnp
import numpy as np
from jax.experimental import pallas as pl
from jax.experimental.pallas import tpu as pltpu


def _pos_enc_kernel(enc_ref, phase_ref, pos_ref, out_ref):
    # enc_ref:   (enc_dim, 3)   coordinate selector * (scale / dim_t) per channel
    # phase_ref: (enc_dim, 1)   0 (sin rows) or pi/2 (cos rows)
    # pos_ref:   (1, 3, TN)     coords on sublanes, points on lanes
    # out_ref:   (1, enc_dim, TN)
    p = pos_ref[0]                                        # (3, TN)
    p_min = jnp.min(p, axis=0, keepdims=True)             # (1, TN) min over coords
    p_max = jnp.max(p, axis=0, keepdims=True)             # (1, TN) max over coords
    # NOTE: matches PyTorch exactly -> Inf/NaN if a point's 3 coords are equal.
    inv_span = pl.reciprocal(p_max - p_min, approx=False)
    pn = ((p - p_min) * inv_span - 0.5) * (2.0 * np.pi)   # (3, TN)

    # Channel replication + frequency scaling fused into one tiny MXU matmul
    # (K=3).  HIGHEST precision keeps the f32 angles exact; sin/cos interleave
    # is baked into the phase column so a single EUP/VPU sin covers all rows.
    ang = jnp.dot(enc_ref[...], pn,
                  preferred_element_type=jnp.float32,
                  precision=jax.lax.Precision.HIGHEST) + phase_ref[...]
    out_ref[0] = jnp.sin(ang).astype(out_ref.dtype)       # single lane-dense store


def _choose_block_n(N, enc_dim, out_itemsize, target_out_bytes=2 << 20):
    """Largest lane-dense (multiple-of-128) N tile with a ~2 MiB output block.

    ~2 MiB per output tile -> <= ~10 MiB live VMEM with double buffering plus
    the f32 intermediates, comfortably inside the default scoped VMEM on every
    generation (16 MiB v5e, 32 MiB v6e/v7x), while >= 512 points/tile keeps the
    ~0.35 us/step grid overhead amortized for small enc_dim.
    """
    if N <= 256:
        return N  # full extent is always a legal block shape
    tn = target_out_bytes // max(1, enc_dim * out_itemsize)
    tn = int(max(512, min(8192, tn)))
    tn = max(128, (tn // 128) * 128)
    tn = min(tn, ((N + 127) // 128) * 128)
    # Prefer an exact divisor of N to avoid ragged (masked) tail tiles.
    t = tn
    while t >= 128:
        if N % t == 0:
            return t
        t -= 128
    return tn


def position_encoding_3d(pos, enc_dim, scale=math.pi, temperature=10000.0,
                         block_n=None, out_dtype=jnp.float32):
    """pos: (B, N, 3) float -> (B, enc_dim, N) (matches the PyTorch output)."""
    B, N, C = pos.shape
    assert C == 3, "PositionEncoding3D expects 3-D coordinates in the last dim"
    freq = int(math.ceil(enc_dim / 6))
    two_f = 2 * freq

    # Per-channel tables (passed as kernel INPUTS, not captured constants):
    #   row r -> coordinate coord = r // (2*freq)
    #            frequency  f     = (r % (2*freq)) // 2
    #            sin/cos    s     = r % 2      (cos via sin(x + pi/2))
    rows = np.arange(enc_dim)
    coord = rows // two_f
    f_idx = (rows % two_f) // 2
    coef = (scale / (temperature ** (f_idx.astype(np.float64) / freq))).astype(np.float32)
    enc_mat = np.zeros((enc_dim, 3), np.float32)
    enc_mat[rows, coord] = coef
    phase = ((rows % 2).astype(np.float32) * (0.5 * np.pi)).reshape(enc_dim, 1)

    # Lane-dense glue transpose of the *small* input (3 floats/point); output
    # traffic (enc_dim * itemsize bytes/point) dominates total HBM traffic.
    pos_t = jnp.transpose(pos, (0, 2, 1)).astype(jnp.float32)   # (B, 3, N)

    out_itemsize = np.dtype(out_dtype).itemsize
    tn = _choose_block_n(N, enc_dim, out_itemsize) if block_n is None else block_n
    n_tiles = pl.cdiv(N, tn)
    # v7x has 2 TensorCores: make sure a B==1 call still has >= 2 parallel steps.
    if B == 1 and n_tiles < 2 and N > 128:
        tn = max(128, ((pl.cdiv(N, 2) + 127) // 128) * 128)
        n_tiles = pl.cdiv(N, tn)

    cost = pl.CostEstimate(
        flops=int(B * N * (2 * enc_dim + 12)),
        transcendentals=int(B * N * enc_dim),
        bytes_accessed=int(B * N * (3 * 4 + enc_dim * out_itemsize)))

    return pl.pallas_call(
        _pos_enc_kernel,
        out_shape=jax.ShapeDtypeStruct((B, enc_dim, N), out_dtype),
        grid_spec=pltpu.PrefetchScalarGridSpec(
            num_scalar_prefetch=0,
            grid=(B, n_tiles),
            in_specs=[
                pl.BlockSpec((enc_dim, 3), lambda b, n: (0, 0)),     # enc_mat
                pl.BlockSpec((enc_dim, 1), lambda b, n: (0, 0)),     # phase
                pl.BlockSpec((1, 3, tn), lambda b, n: (b, 0, n)),    # pos (B,3,N)
            ],
            out_specs=pl.BlockSpec((1, enc_dim, tn), lambda b, n: (b, 0, n)),
        ),
        compiler_params=pltpu.CompilerParams(
            dimension_semantics=("parallel", "parallel"),
            vmem_limit_bytes=32 * 1024 * 1024),
        cost_estimate=cost,
    )(jnp.asarray(enc_mat), jnp.asarray(phase), pos_t)


def _reference_numpy(pos, enc_dim, scale=math.pi, temperature=10000.0):
    # Direct transcription of the PyTorch forward (for verification).
    pos = np.asarray(pos, dtype=np.float32)
    freq = int(math.ceil(enc_dim / 6))
    p_min = pos.min(axis=-1, keepdims=True)
    p_max = pos.max(axis=-1, keepdims=True)
    p = ((pos - p_min) / (p_max - p_min) - 0.5) * 2 * np.pi
    dim_t = temperature ** (np.arange(freq, dtype=np.float32) / freq)
    p = p[..., None] * scale / dim_t                       # (B, N, 3, freq)
    out = np.stack([np.sin(p), np.cos(p)], axis=-1)        # (B, N, 3, freq, 2)
    out = out.reshape(out.shape[0], out.shape[1], -1)[..., :enc_dim]
    return out.transpose(0, 2, 1)                          # (B, enc_dim, N)


if __name__ == "__main__":
    key = jax.random.PRNGKey(0)
    B, N, ENC_DIM = 2, 384, 32          # N=384 -> one 384-point lane-dense tile
    pos = jax.random.uniform(key, (B, N, 3), dtype=jnp.float32)

    out = jax.block_until_ready(position_encoding_3d(pos, ENC_DIM))
    assert out.shape == (B, ENC_DIM, N)

    ref = _reference_numpy(np.asarray(pos), ENC_DIM)
    np.testing.assert_allclose(np.asarray(out), ref, rtol=1e-4, atol=1e-4)
    print("KERNEL_OK")
</pallas_src>

<mosaic_0001>
module attributes {stable_mosaic.version = 11 : i64} {
  func.func @_pos_enc_kernel(%arg0: i32, %arg1: i32, %arg2: memref<32x3xf32, #tpu.memory_space<vmem>>, %arg3: memref<32x1xf32, #tpu.memory_space<vmem>>, %arg4: memref<1x3x384xf32, #tpu.memory_space<vmem>>, %arg5: memref<1x32x384xf32, #tpu.memory_space<vmem>>) attributes {dimension_semantics = [#tpu.dimension_semantics<parallel>, #tpu.dimension_semantics<parallel>], iteration_bounds = array<i64: 2, 1>, scalar_prefetch = 0 : i64, scratch_operands = 0 : i64, tpu.core_type = #tpu.core_type<tc>, window_params = [{pipeline_mode = #tpu.pipeline_mode<synchronous>, transform_indices = @transform_0, window_bounds = array<i64: 32, 3>}, {pipeline_mode = #tpu.pipeline_mode<synchronous>, transform_indices = @transform_1, window_bounds = array<i64: 32, 1>}, {transform_indices = @transform_2, window_bounds = array<i64: 1, 3, 384>}, {transform_indices = @transform_3, window_bounds = array<i64: 1, 32, 384>}]} {
    %c0 = arith.constant 0 : index
    %c0_0 = arith.constant 0 : index
    %c0_1 = arith.constant 0 : index
    %0 = vector.load %arg4[%c0, %c0_0, %c0_1] : memref<1x3x384xf32, #tpu.memory_space<vmem>>, vector<1x3x384xf32>
    %1 = vector.shape_cast %0 : vector<1x3x384xf32> to vector<3x384xf32>
    %cst = arith.constant dense<0x7F800000> : vector<384xf32>
    %2 = vector.multi_reduction <minimumf>, %1, %cst [0] : vector<3x384xf32> to vector<384xf32>
    %3 = vector.shape_cast %2 : vector<384xf32> to vector<1x384xf32>
    %cst_2 = arith.constant dense<0xFF800000> : vector<384xf32>
    %4 = vector.multi_reduction <maximumf>, %1, %cst_2 [0] : vector<3x384xf32> to vector<384xf32>
    %5 = vector.shape_cast %4 : vector<384xf32> to vector<1x384xf32>
    %6 = arith.subf %5, %3 : vector<1x384xf32>
    %7 = tpu.reciprocal %6 : vector<1x384xf32> -> vector<1x384xf32>
    %8 = vector.broadcast %3 : vector<1x384xf32> to vector<3x384xf32>
    %9 = arith.subf %1, %8 : vector<3x384xf32>
    %10 = vector.broadcast %7 : vector<1x384xf32> to vector<3x384xf32>
    %11 = arith.mulf %9, %10 : vector<3x384xf32>
    %cst_3 = arith.constant 5.000000e-01 : f32
    %12 = vector.broadcast %cst_3 : f32 to vector<3x384xf32>
    %13 = arith.subf %11, %12 : vector<3x384xf32>
    %cst_4 = arith.constant 6.28318548 : f32
    %14 = vector.broadcast %cst_4 : f32 to vector<3x384xf32>
    %15 = arith.mulf %13, %14 : vector<3x384xf32>
    %c0_5 = arith.constant 0 : index
    %c0_6 = arith.constant 0 : index
    %16 = vector.load %arg2[%c0_5, %c0_6] : memref<32x3xf32, #tpu.memory_space<vmem>>, vector<32x3xf32>
    %cst_7 = arith.constant dense<0.000000e+00> : vector<32x384xf32>
    %17 = tpu.matmul %16, %15, %cst_7 {dimension_numbers = #tpu.dot_dimension_numbers<[1], [0], [0], [1], [0, 0, 1, 1], [], []>, precision = #tpu.contract_precision<fp32>} : vector<32x3xf32>, vector<3x384xf32>, vector<32x384xf32> -> vector<32x384xf32>
    %c0_8 = arith.constant 0 : index
    %c0_9 = arith.constant 0 : index
    %18 = vector.load %arg3[%c0_8, %c0_9] : memref<32x1xf32, #tpu.memory_space<vmem>>, vector<32x1xf32>
    %19 = vector.broadcast %18 : vector<32x1xf32> to vector<32x384xf32>
    %20 = arith.addf %17, %19 : vector<32x384xf32>
    %21 = math.sin %20 : vector<32x384xf32>
    %c0_10 = arith.constant 0 : index
    %c0_11 = arith.constant 0 : index
    %c0_12 = arith.constant 0 : index
    %22 = vector.load %arg5[%c0_10, %c0_11, %c0_12] : memref<1x32x384xf32, #tpu.memory_space<vmem>>, vector<1x32x384xf32>
    %23 = vector.shape_cast %22 : vector<1x32x384xf32> to vector<32x384xf32>
    %24 = vector.shape_cast %21 : vector<32x384xf32> to vector<1x32x384xf32>
    tpu.vector_store %arg5[%c0_10, %c0_11, %c0_12], %24 {strides = array<i32>} : memref<1x32x384xf32, #tpu.memory_space<vmem>>, vector<1x32x384xf32>,
    return
  }
  func.func @transform_0(%arg0: i32, %arg1: i32) -> (i32, i32) {
    %c0_i32 = arith.constant 0 : i32
    %c0_i32_0 = arith.constant 0 : i32
    %c0_i32_1 = arith.constant 0 : i32
    return %c0_i32, %c0_i32_0 : i32, i32
  }
  func.func @transform_1(%arg0: i32, %arg1: i32) -> (i32, i32) {
    %c0_i32 = arith.constant 0 : i32
    %c0_i32_0 = arith.constant 0 : i32
    %c0_i32_1 = arith.constant 0 : i32
    return %c0_i32, %c0_i32_0 : i32, i32
  }
  func.func @transform_2(%arg0: i32, %arg1: i32) -> (i32, i32, i32) {
    %c0_i32 = arith.constant 0 : i32
    %c0_i32_0 = arith.constant 0 : i32
    return %arg0, %c0_i32, %arg1 : i32, i32, i32
  }
  func.func @transform_3(%arg0: i32, %arg1: i32) -> (i32, i32, i32) {
    %c0_i32 = arith.constant 0 : i32
    %c0_i32_0 = arith.constant 0 : i32
    return %arg0, %c0_i32, %arg1 : i32, i32, i32
  }
}

</mosaic_0001>

<bundles_post_ra>
// kernel: tpu_custom_call.1
= control target key start
LH: loop header
LB: loop body
LE: loop exit
PB: predicated region body
PF: predicated region fallthrough
CT: control target
= control target key end

     0   :  { %8 = vsyncpa [#allocation3], 0  ;;  %s4657_s0 = inlined_call_operand.vmem [shape: f32[32,3], index: 0, kind: input, shape index: {}]   ;;  %s4658_s1 = inlined_call_operand.vmem [shape: f32[32,1], index: 1, kind: input, shape index: {}]   ;;  %s4659_s2 = inlined_call_operand.vmem [shape: f32[2,3,384], index: 2, kind: input, shape index: {}]   ;;  %s4660_s3 = inlined_call_operand.hbm [shape: f32[2,32,384], index: 3, kind: output, shape index: {}]  }
   0x1   :  { %10 = vsyncpa [#allocation3 + $0x1], 0  ;;  %s3357_s12 = smov 0   ;;  %s3359_s13 = smov 0  }
   0x2   :  { %s3361_s14 = smov 0   ;;  %s3363_s15 = smov 0  }
   0x3   :  { %s3365_s16 = smov 0   ;;  %s3367_s17 = smov 0  }
   0x4 LB: > { %s2862_s18 = sadd.s32 4294967295, %s3324_s17   ;;  %s2863_s19 = sadd.s32 4294967294, %s3324_s17   ;;  %s3324_s17 = sphi %s3367_s17, %s16_s17   ;;  %s3320_s16 = sphi %s3365_s16, %s4687_s16   ;;  %s3316_s15 = sphi %s3363_s15, %s4686_s15   ;;  %s3312_s14 = sphi %s3361_s14, %s4685_s14   ;;  %s3308_s13 = sphi %s3359_s13, %s4684_s13   ;;  %s3304_s12 = sphi %s3357_s12, %s4683_s12  }
   0x5   : > { %s28_s20 = sadd.s32 1, %s3320_s16  ;;  %s107_s21 = sadd.s32 1, %s3312_s14 }
   0x6   : > { %p30_p0 = scmp.ge.s32.totalorder %s28_s20, 2  ;;  %p117_p1 = scmp.ne.s32.totalorder %s3312_s14, %s3308_s13 }
   0x7   : > { %p118_p2 = scmp.eq.s32.totalorder %s2862_s18, 1  ;;  %p123_p3 = scmp.ne.s32.totalorder %s3308_s13, %s3304_s12 }
   0x8   : > { %s4689_s20 = smov (%p30_p0, %s28_s20), 0  ;;  %p124_p5 = scmp.eq.s32.totalorder %s2863_s19, 1 }
   0x9   : > { %p3397_p4 = por %p118_p2, %p117_p1  ;;  %s102_s23 = ssub.s32 %s3320_s16, %s4689_s20 }
   0xa   : > { %p2866_p6 = scmp.ge.s32.totalorder %s3324_s17, 1  ;;  %p105_p7 = scmp.eq.s32.totalorder %s102_s23, 0 }
   0xb   : > { %p3404_p8 = por %p124_p5, %p123_p3  ;;  %p161_p9 = scmp.lt.s32.totalorder %s3324_s17, 3 }
   0xc   : > { %s3410_s25 = scalar_select %p105_p7, %s3312_s14, %s107_s21  }
   0xd   : > { %p162_p10 = pnand %p2866_p6, %p161_p9 }
   0xe   : > { %p190_p11 = scmp.lt.s32.totalorder (!%p162_p10), %s3316_s15, 1  ;;  %v3326_v0 = vmov (!%p162_p10), 0.0   ;;  %v274_v1 = vld [vmem:[%s4658_s1] sm:$0xff] (!%p162_p10)  ;;  %v3327_v2 = vmov (!%p162_p10), 0   ;;  %v276_v3 = vld [vmem:[%s4658_s1 + $0x10] sm:$0xff] (!%p162_p10)  ;;  %v275_v4 = vld [vmem:[%s4658_s1 + $0x8] sm:$0xff] (!%p162_p10) }
   0xf   : > { %165 = sbr.rel (%p162_p10) target bundleno = 700 (0x2bc), region = 32  ;;  %386 = vmatprep.mubr.f32.mxu1 (!%p162_p10), %v3326_v0  ;;  %505 = vmatprep.mubr.f32.mxu0 (!%p162_p10), %v3326_v0  ;;  %vm205_vm0 = vcmask (!%p162_p10), 1042432   ;;  %v277_v5 = vld [vmem:[%s4658_s1 + $0x18] sm:$0xff] (!%p162_p10)  ;;  %v270_v54 = vld [vmem:[%s4657_s0] sm:$0xff] (!%p162_p10)  ;;  %vm301_vm1 = vcmask (!%p162_p10), 23552   ;;  %v271_v56 = vld [vmem:[%s4657_s0 + $0x8] sm:$0xff] (!%p162_p10) }
  0x10   : > { %3189 = vset.pattern.permute.xlu0 (!%p162_p10), %v3327_v2  ;;  %3190 = vset.pattern.permute.xlu1 (!%p162_p10), %v3327_v2  ;;  %v303_v55 = vsel (!%p162_p10), %vm301_vm1, %v270_v54, 0  ;;  %v306_v61 = vsel (!%p162_p10), %vm301_vm1, %v271_v56, 0  ;;  %v272_v62 = vld [vmem:[%s4657_s0 + $0x10] sm:$0xff] (!%p162_p10)  ;;  %s186_s30 = sand.u32 (!%p162_p10), 1, %s3308_s13   ;;  %s3123_s6 = smul.u32 (!%p162_p10), 1536, %s3316_s15 }
  0x11   : > { %280 = vperm.xlu0 (!%p162_p10), %3189, %v274_v1   ;;  %290 = vperm.xlu1 (!%p162_p10), %3190, %v276_v3   ;;  %v3454_v58 = vand.u32 (!%p162_p10), 4294901760, %v303_v55  ;;  %s4611_s10 = scalar_lea.sflag (!%p162_p10), [#allocation3], %s186_s30  ;;  %s3334_s18 = smov (!%p162_p10), [#allocation2]  }
  0x12   : > { %s3250_s19 = sshll.u32 (!%p162_p10), %s3334_s18, 4  ;;  %s3251_s19 = int_to_ptr.vmem [resolvable:$false] %s3250_s19 }
  0x13   : > { %v3463_v2 = vsub.f32 (!%p162_p10), %v303_v55, %v3454_v58  ;;  %s3252_s21 = scalar_lea.vmem (!%p162_p10), %s3251_s19, 3072 }
  0x15   : > { %285 = vperm.xlu0 (!%p162_p10), %3189, %v275_v4   ;;  %295 = vperm.xlu1 (!%p162_p10), %3190, %v277_v5   ;;  %v3465_v5 = vand.u32 (!%p162_p10), 4294901760, %v306_v61 }
  0x16   : > { %s191_s28 = scalar_select %p190_p11, %s3316_s15, 1 }
  0x17   : > { %s4606_s15 = scalar_lea.hbm %s4660_s3, %s3123_s6 }
  0x18   : > { %s3074_s4 = smul.u32 12, %s191_s28 }
  0x1a   : > { %s197_s11 = scalar_lea.vmem %s4659_s2, %s3074_s4  ;;  %s3891_s4 = smul.u32 96, %s186_s30 }
  0x1b   : > { %v3431_v6 = vld [vmem:[%s197_s11] sm:$0x77]  ;;  %v3433_v7 = vld [vmem:[%s197_s11 + $0x8] sm:$0x7] }
  0x1c   : > { %v203_v8 = vcombine.high %v3431_v6, %v3431_v6  ;;  %v206_v9 = vsel %vm205_vm0, %v3431_v6, inf  ;;  %v220_v10 = vsel %vm205_vm0, %v3433_v7, inf  ;;  %v227_v11 = vsel %vm205_vm0, %v3431_v6, -inf  ;;  %s3934_s5 = scalar_lea.vmem [#allocation2], %s3891_s4 }
  0x1d   : > { %v207_v12 = vrot.slane %v206_v9, 4  ;;  %v221_v13 = vrot.slane %v220_v10, 4  ;;  %v228_v14 = vrot.slane %v227_v11, 4  ;;  %v241_v15 = vsel %vm205_vm0, %v3433_v7, -inf  ;;  %s2783_s7 = sshll.u32 %s3934_s5, 4  ;;  %s4600_s7 = int_to_ptr.vmem [resolvable:$true] %s2783_s7 }
  0x1e   : > { %v213_v16 = vsel %vm205_vm0, %v203_v8, inf  ;;  %v234_v17 = vsel %vm205_vm0, %v203_v8, -inf  ;;  %v242_v18 = vrot.slane %v241_v15, 4  ;;  %v309_v8 = vsel %vm301_vm1, %v272_v62, 0  ;;  %s3246_s11 = scalar_lea.vmem %s4600_s7, 1536  ;;  %p3253_p1 = scmp.lt.s32.totalorder %s4600_s7, %s3251_s19 }
  0x1f   : > { %v208_v19 = vmin.f32 %v206_v9, %v207_v12  ;;  %v214_v20 = vrot.slane %v213_v16, 4  ;;  %v222_v21 = vmin.f32 %v220_v10, %v221_v13  ;;  %v229_v22 = vmax.f32 %v227_v11, %v228_v14  ;;  %v273_v9 = vld [vmem:[%s4657_s0 + $0x18] sm:$0xff]  ;;  %p3247_p12 = scmp.ne.s32.totalorder %s4600_s7, %s3246_s11  ;;  %p3254_p2 = scmp.lt.s32.totalorder %s3252_s21, %s3246_s11 }
  0x20   : > { %v235_v23 = vrot.slane %v234_v17, 4  ;;  %v243_v24 = vmax.f32 %v241_v15, %v242_v18  ;;  %v3472_v11 = vand.u32 4294901760, %v3463_v2  ;;  %v3474_v12 = vand.u32 4294901760, %v309_v8 }
  0x21   : > { %v209_v25 = vrot.slane %v208_v19, 2  ;;  %v215_v26 = vmin.f32 %v213_v16, %v214_v20  ;;  %v223_v27 = vrot.slane %v222_v21, 2  ;;  %v230_v28 = vrot.slane %v229_v22, 2  ;;  %p3248_p13 = pnand %p3247_p12, %p3397_p4  ;;  %p3255_p3 = por %p3254_p2, %p3253_p1 }
  0x22   : > { %v236_v29 = vmax.f32 %v234_v17, %v235_v23  ;;  %v244_v30 = vrot.slane %v243_v24, 2  ;;  %v3477_v13 = vsub.f32 %v306_v61, %v3465_v5  ;;  %v312_v14 = vsel %vm301_vm1, %v273_v9, 0 }
  0x23   : > { %v210_v31 = vmin.f32 %v208_v19, %v209_v25  ;;  %v216_v32 = vrot.slane %v215_v26, 2  ;;  %v224_v33 = vmin.f32 %v222_v21, %v223_v27  ;;  %v231_v34 = vmax.f32 %v229_v22, %v230_v28  ;;  %p3249_p0 = pneg %p3248_p13 }
  0x24   : > { %v237_v35 = vrot.slane %v236_v29, 2  ;;  %v245_v36 = vmax.f32 %v243_v24, %v244_v30  ;;  %v390_v17 = vsub.f32 %v3463_v2, %v3472_v11  ;;  %v3483_v18 = vsub.f32 %v309_v8, %v3474_v12 }
  0x25   : > { %v211_v37 = vrot.slane %v210_v31, 1  ;;  %v217_v38 = vmin.f32 %v215_v26, %v216_v32  ;;  %v225_v39 = vrot.slane %v224_v33, 1  ;;  %v232_v40 = vrot.slane %v231_v34, 1  ;;  %p3256_p5 = pnand %p3255_p3, %p3249_p0 }
  0x26   : > { %v238_v41 = vmax.f32 %v236_v29, %v237_v35  ;;  %v246_v42 = vrot.slane %v245_v36, 1  ;;  %v3485_v19 = vand.u32 4294901760, %v312_v14  ;;  %v3488_v21 = vand.u32 4294901760, %v3477_v13 }
  0x27   : > { %v212_v43 = vmin.f32 %v210_v31, %v211_v37  ;;  %v218_v44 = vrot.slane %v217_v38, 1  ;;  %v226_v45 = vmin.f32 %v224_v33, %v225_v39  ;;  %v233_v46 = vmax.f32 %v231_v34, %v232_v40 }
  0x28   : > { %v239_v47 = vrot.slane %v238_v41, 1  ;;  %v247_v48 = vmax.f32 %v245_v36, %v246_v42  ;;  %v391_v26 = vand.u32 4294901760, %v390_v17  ;;  %v3495_v27 = vand.u32 4294901760, %v3483_v18 }
  0x29   : > { %v219_v49 = vmin.f32 %v217_v38, %v218_v44  ;;  %v248_v50 = vsub.f32 %v233_v46, %v212_v43  ;;  %v259_v59 = vsub.f32 %v3433_v7, %v226_v45  ;;  %v3498_v28 = vsub.f32 %v312_v14, %v3485_v19 }
  0x2a   : > { %v240_v51 = vmax.f32 %v238_v41, %v239_v47  ;;  %v250_v52 = vsub.f32 %v247_v48, %v226_v45  ;;  %v401_v30 = vsub.f32 %v3477_v13, %v3488_v21  ;;  %v412_v40 = vsub.f32 %v3483_v18, %v3495_v27 }
  0x2b   : > { %3192 = vrcp.f32 %v248_v50  ;;  %v256_v57 = vcombine.low %v212_v43, %v219_v49  ;;  %v3513_v35 = vand.u32 4294901760, %v3498_v28 }
  0x2c   : > { %v249_v53 = vsub.f32 %v240_v51, %v219_v49  ;;  %3194 = vrcp.f32 %v250_v52  ;;  %v402_v37 = vand.u32 4294901760, %v401_v30  ;;  %v413_v45 = vand.u32 4294901760, %v412_v40 }
  0x2d   : > { %v258_v1 = vsub.f32 %v3431_v6, %v256_v57  ;;  %v423_v46 = vsub.f32 %v3498_v28, %v3513_v35 }
  0x2e   : > { %3196 = vrcp.f32 %v249_v53 }
  0x2f   : > { %v424_v48 = vand.u32 4294901760, %v423_v46 }
  0x35   : > { %v3193_v60 = vpop.eup %3192 }
  0x36   : > { %v3195_v63 = vpop.eup %3194 }
  0x37   : > { %v265_v4 = vmul.f32 %v3195_v63, %v259_v59 }
  0x38   : > { %v3197_v3 = vpop.eup %3196 }
  0x39   : > { %v262_v7 = vcombine.low %v3193_v60, %v3197_v3  ;;  %v2869_v6 = vadd.f32 -0.5, %v265_v4 }
  0x3b   : > { %v264_v10 = vmul.f32 %v262_v7, %v258_v1  ;;  %v269_v20 = vmul.f32 6.2831855, %v2869_v6 }
  0x3d   : > { %v2868_v15 = vadd.f32 -0.5, %v264_v10  ;;  %v318_v32 = vsel %vm205_vm0, %v269_v20, 0 }
  0x3e   : > { %v3515_v36 = vand.u32 4294901760, %v318_v32 }
  0x3f   : > { %v268_v16 = vmul.f32 6.2831855, %v2868_v15 }
  0x40   : > { %v1040_v43 = vsub.f32 %v318_v32, %v3515_v36 }
  0x41   : > { %v300_v22 = vcombine.high %v268_v16, %v268_v16  ;;  %v314_v23 = vsel %vm205_vm0, %v268_v16, 0 }
  0x42   : > { %v3491_v24 = vand.u32 4294901760, %v314_v23  ;;  %v3525_v47 = vand.u32 4294901760, %v1040_v43 }
  0x43   : > { %v316_v25 = vsel %vm205_vm0, %v300_v22, 0 }
  0x44   : > { %v3500_v29 = vand.u32 4294901760, %v316_v25  ;;  %v3505_v31 = vsub.f32 %v314_v23, %v3491_v24  ;;  %v1042_v49 = vsub.f32 %v1040_v43, %v3525_v47 }
  0x46   : > { %321 = vmatprep.subr.mxu1 %v3500_v29  ;;  %v432_v33 = vsub.f32 %v316_v25, %v3500_v29  ;;  %v439_v34 = vand.u32 4294901760, %v3505_v31  ;;  %v1043_v50 = vand.u32 4294901760, %v1042_v49  ;;  %v3331_v49 = vmov 2102212464  }
  0x47   : > { %323 = vmatpush1.msra.mxu1 %v3491_v24 }
  0x48   : > { %392 = vmatmul.mubr.f32.vlgmr.msra.gmra.mrb[0].mxu1 %v391_v26  ;;  %v433_v38 = vand.u32 4294901760, %v432_v33  ;;  %v440_v39 = vsub.f32 %v3505_v31, %v439_v34 }
  0x49   : > { %397 = vmatprep.mubr.f32.mxu1 %v3326_v0 }
  0x4a   : > { %v434_v41 = vsub.f32 %v432_v33, %v433_v38  ;;  %v441_v42 = vand.u32 4294901760, %v440_v39 }
  0x4c   : > { %403 = vmatmul.mubr.f32.gmra.mrb[2].mxu1 %v402_v37  ;;  %v435_v44 = vand.u32 4294901760, %v434_v41  ;;  %v3328_v41 = vmov 683565275  }
  0x4d   : > { %408 = vmatprep.mubr.f32.mxu1 %v3326_v0 }
  0x4e   : > { %436 = vmatprep.subr.mxu0 %v435_v44  ;;  %2999 = vmatprep.subr.mxu1 %v435_v44 }
  0x4f   : > { %442 = vmatpush1.msra.mxu0 %v441_v42  ;;  %3000 = vmatpush1.msra.mxu1 %v441_v42 }
  0x50   : > { %414 = vmatmul.mubr.f32.gmra.mrb[4].mxu1 %v413_v45  ;;  %507 = vmatmul.mubr.f32.vlgmr.msra.gmra.mrb[0].mxu0 %v3454_v58 }
  0x51   : > { %536 = vmatprep.subr.mxu0 %v432_v33  ;;  %419 = vmatprep.mubr.f32.mxu1 %v3326_v0 }
  0x52   : > { %539 = vmatpush1.msra.mxu0 %v3505_v31  ;;  %512 = vmatprep.mubr.f32.mxu0 %v3326_v0 }
  0x53   : > { %636 = vmatprep.subr.mxu0 %v3500_v29  ;;  %2951 = vmatprep.subr.mxu1 %v3515_v36 }
  0x54   : > { %425 = vmatmul.mubr.f32.gmra.mrb[6].mxu1 %v424_v48  ;;  %514 = vmatmul.mubr.f32.gmra.mrb[2].mxu0 %v3465_v5 }
  0x55   : > { %519 = vmatprep.mubr.f32.mxu1 %v3326_v0  ;;  %602 = vmatprep.mubr.f32.mxu0 %v3326_v0 }
  0x58   : > { %521 = vmatmul.mubr.f32.vlgmr.msra.gmra.mrb[4].mxu1 %v3474_v12  ;;  %605 = vmatmul.mubr.f32.vlgmr.msra.gmra.mrb[0].mxu0 %v3463_v2 }
  0x59   : > { %638 = vmatpush1.msra.mxu0 %v3491_v24  ;;  %526 = vmatprep.mubr.f32.mxu1 %v3326_v0 }
  0x5a   : > { %610 = vmatprep.mubr.f32.mxu0 %v3326_v0  ;;  %2952 = vmatpush3.msra.mxu1 %v3515_v36 }
  0x5b   : > { %2959 = vmatprep.subr.mxu1 %v1043_v50  ;;  %741 = vmatprep.subr.mxu0 %v433_v38 }
  0x5c   : > { %528 = vmatmul.mubr.f32.gmra.mrb[6].mxu1 %v3485_v19  ;;  %613 = vmatmul.mubr.f32.gmra.mrb[2].mxu0 %v3477_v13 }
  0x5d   : > { %618 = vmatprep.mubr.f32.mxu0 %v3326_v0  ;;  %2953 = vmatprep.mubr.f32.mxu1 %v391_v26 }
  0x60   : > { %621 = vmatmul.mubr.f32.gmra.mrb[4].mxu0 %v3483_v18  ;;  %2954 = vmatmul.mubr.f32.vlgmr.msra.gmra.mrb[8].mxu1 %v402_v37 }
  0x61   : > { %626 = vmatprep.mubr.f32.mxu0 %v3326_v0  ;;  %2956 = vmatprep.mubr.f32.mxu1 %v413_v45  ;;  %v3329_v45 = vmov 2475754826  }
  0x62   : > { %2960 = vmatpush3.msra.mxu1 %v1043_v50 }
  0x63   : > { %2967 = vmatprep.subr.mxu1 %v1040_v43 }
  0x64   : > { %629 = vmatmul.mubr.f32.gmra.mrb[6].mxu0 %v3498_v28  ;;  %2957 = vmatmul.mubr.f32.gmra.mrb[10].mxu1 %v424_v48 }
  0x65   : > { %701 = vmatprep.mubr.f32.mxu0 %v3326_v0  ;;  %2961 = vmatprep.mubr.f32.mxu1 %v3454_v58 }
  0x68   : > { %705 = vmatmul.mubr.f32.vlgmr.msra.gmra.mrb[0].mxu0 %v3472_v11  ;;  %2962 = vmatmul.mubr.f32.vlgmr.msra.gmra.mrb[8].mxu1 %v3465_v5 }
  0x69   : > { %745 = vmatpush1.msra.mxu0 %v439_v34  ;;  %710 = vmatprep.mubr.f32.mxu0 %v3326_v0 }
  0x6a   : > { %2964 = vmatprep.mubr.f32.mxu1 %v3474_v12  ;;  %2968 = vmatpush3.msra.mxu1 %v1040_v43 }
  0x6b   : > { %2975 = vmatprep.subr.mxu1 %v3515_v36  ;;  %838 = vmatprep.subr.mxu0 %v3500_v29 }
  0x6c   : > { %714 = vmatmul.mubr.f32.gmra.mrb[2].mxu0 %v3488_v21  ;;  %2965 = vmatmul.mubr.f32.gmra.mrb[10].mxu1 %v3485_v19 }
  0x6d   : > { %719 = vmatprep.mubr.f32.mxu0 %v3326_v0  ;;  %2969 = vmatprep.mubr.f32.mxu1 %v3463_v2 }
  0x70   : > { %723 = vmatmul.mubr.f32.gmra.mrb[4].mxu0 %v3495_v27  ;;  %2970 = vmatmul.mubr.f32.vlgmr.msra.gmra.mrb[8].mxu1 %v3477_v13 }
  0x71   : > { %728 = vmatprep.mubr.f32.mxu0 %v3326_v0  ;;  %2972 = vmatprep.mubr.f32.mxu1 %v3483_v18 }
  0x72   : > { %2976 = vmatpush3.msra.mxu1 %v3515_v36 }
  0x73   : > { %2983 = vmatprep.subr.mxu1 %v3525_v47 }
  0x74   : > { %732 = vmatmul.mubr.f32.gmra.mrb[6].mxu0 %v3513_v35  ;;  %2973 = vmatmul.mubr.f32.gmra.mrb[10].mxu1 %v3498_v28 }
  0x75   : > { %808 = vmatprep.mubr.f32.mxu0 %v3326_v0  ;;  %2977 = vmatprep.mubr.f32.mxu1 %v3472_v11 }
  0x78   : > { %810 = vmatmul.mubr.f32.vlgmr.msra.gmra.mrb[0].mxu0 %v3454_v58  ;;  %2978 = vmatmul.mubr.f32.vlgmr.msra.gmra.mrb[8].mxu1 %v3488_v21 }
  0x79   : > { %840 = vmatpush1.msra.mxu0 %v3491_v24  ;;  %815 = vmatprep.mubr.f32.mxu0 %v3326_v0 }
  0x7a   : > { %2980 = vmatprep.mubr.f32.mxu1 %v3495_v27  ;;  %2984 = vmatpush3.msra.mxu1 %v3525_v47  ;;  %v3330_v47 = vmov 2131351028  }
  0x7b   : > { %2991 = vmatprep.subr.mxu1 %v3515_v36 }
  0x7c   : > { %817 = vmatmul.mubr.f32.gmra.mrb[2].mxu0 %v3465_v5  ;;  %2981 = vmatmul.mubr.f32.gmra.mrb[10].mxu1 %v3513_v35 }
  0x7d   : > { %822 = vmatprep.mubr.f32.mxu0 %v3326_v0  ;;  %2985 = vmatprep.mubr.f32.mxu1 %v3454_v58 }
  0x80   : > { %824 = vmatmul.mubr.f32.gmra.mrb[4].mxu0 %v3474_v12  ;;  %2986 = vmatmul.mubr.f32.vlgmr.msra.gmra.mrb[8].mxu1 %v3465_v5 }
  0x81   : > { %829 = vmatprep.mubr.f32.mxu0 %v3326_v0  ;;  %2988 = vmatprep.mubr.f32.mxu1 %v3474_v12 }
  0x82   : > { %2992 = vmatpush3.msra.mxu1 %v3515_v36 }
  0x84   : > { %831 = vmatmul.mubr.f32.gmra.mrb[6].mxu0 %v3485_v19  ;;  %2989 = vmatmul.mubr.f32.gmra.mrb[10].mxu1 %v3485_v19 }
  0x85   : > { %903 = vmatprep.mubr.f32.mxu0 %v3326_v0  ;;  %2993 = vmatprep.mubr.f32.mxu1 %v3454_v58 }
  0x88   : > { %905 = vmatmul.mubr.f32.vlgmr.msra.gmra.mrb[0].mxu0 %v3454_v58  ;;  %2994 = vmatmul.mubr.f32.vlgmr.msra.gmra.mrb[8].mxu1 %v3465_v5 }
  0x89   : > { %910 = vmatprep.mubr.f32.mxu0 %v3326_v0  ;;  %2996 = vmatprep.mubr.f32.mxu1 %v3474_v12 }
  0x8c   : > { %912 = vmatmul.mubr.f32.gmra.mrb[2].mxu0 %v3465_v5  ;;  %2997 = vmatmul.mubr.f32.gmra.mrb[10].mxu1 %v3485_v19 }
  0x8d   : > { %917 = vmatprep.mubr.f32.mxu0 %v3326_v0 }
  0x90   : > { %919 = vmatmul.mubr.f32.gmra.mrb[4].mxu0 %v3474_v12  ;;  %v281_v51 = vpop.permute.xlu0 %280 }
  0x91   : > { %924 = vmatprep.mubr.f32.mxu0 %v3326_v0 }
  0x94   : > { %926 = vmatmul.mubr.f32.gmra.mrb[6].mxu0 %v3485_v19  ;;  %v286_v54 = vpop.permute.xlu0 %285 }
 0x11b   : > { %v393_v52 = vpop.f32.mrb[0].mxu1 }
 0x11c   : > { %v395_v53 = vpop.f32.mrb[1].mxu1  ;;  %v394_v0 = vadd.f32 %v393_v52, %v281_v51 }
 0x11d   : > { %v396_v63 = vadd.f32 %v395_v53, %v281_v51 }
 0x11f   : > { %v404_v55 = vpop.f32.mrb[2].mxu1 }
 0x120   : > { %v3601_v56 = vadd.f32 %v404_v55, %v286_v54  ;;  %v406_v57 = vpop.f32.mrb[3].mxu1 }
 0x121   : > { %v3603_v58 = vadd.f32 %v406_v57, %v286_v54 }
 0x12b   : > { %v3605_v59 = vpop.f32.mrb[4].mxu1 }
 0x12c   : > { %v3607_v60 = vpop.f32.mrb[5].mxu1 }
 0x12f   : > { %v3609_v61 = vpop.f32.mrb[6].mxu1 }
 0x130   : > { %v3611_v62 = vpop.f32.mrb[7].mxu1 }
 0x15b   : > { %v906_v1 = vpop.f32.mrb[0].mxu0  ;;  %v2995_v2 = vpop.f32.mrb[8].mxu1 }
 0x15c   : > { %v3613_v3 = vadd.f32 %v906_v1, %v394_v0  ;;  %v3615_v4 = vadd.f32 %v2995_v2, %v286_v54  ;;  %v908_v5 = vpop.f32.mrb[1].mxu0  ;;  %v1485_v8 = vpop.f32.mrb[9].mxu1 }
 0x15d   : > { %v3617_v7 = vadd.f32 %v908_v5, %v396_v63  ;;  %v3634_v25 = vadd.f32 %v1485_v8, %v281_v51  ;;  %v3332_v51 = vmov 920167782   ;;  %v3333_v63 = vmov 1326507024  }
 0x15e   : > { %v1507_v9 = vand.u32 2147483647, %v3613_v3  ;;  %v1510_v10 = vand.u32 2139095040, %v3613_v3  ;;  %v2027_v11 = vand.u32 2147483647, %v3615_v4  ;;  %v2030_v12 = vand.u32 2139095040, %v3615_v4 }
 0x15f   : > { %v3623_v6 = vpop.f32.mrb[2].mxu0  ;;  %v3625_v13 = vpop.f32.mrb[10].mxu1  ;;  %v1614_v18 = vand.u32 2139095040, %v3617_v7  ;;  %v1611_v28 = vand.u32 2147483647, %v3617_v7  ;;  %v1718_v39 = vand.u32 2139095040, %v3634_v25 }
 0x160   : > { %v1511_v14 = vshrl.u32 %v1510_v10, 23  ;;  %v1514_v15 = vand.u32 8388607, %v1507_v9  ;;  %v2031_v16 = vshrl.u32 %v2030_v12, 23  ;;  %v2034_v17 = vand.u32 8388607, %v2027_v11 }
 0x161   : > { %v3632_v20 = vpop.f32.mrb[3].mxu0  ;;  %v1615_v22 = vshrl.u32 %v1614_v18, 23  ;;  %v3637_v30 = vpop.f32.mrb[11].mxu1  ;;  %v3645_v37 = vand.u32 8388607, %v1611_v28  ;;  %vm1509_vm15 = vcmp.lt.s32.totalorder %v3613_v3, 0 }
 0x162   : > { %v2870_v19 = vadd.s32 4294967169, %v1511_v14  ;;  %v2890_v21 = vadd.s32 4294967169, %v2031_v16  ;;  %v1515_v23 = vor.u32 8388608, %v1514_v15  ;;  %v2035_v26 = vor.u32 8388608, %v2034_v17 }
 0x163   : > { %v2874_v29 = vadd.s32 4294967169, %v1615_v22  ;;  %vm3737_vm0 = vcmp.le.f32.partialorder %v1507_v9, 0.7853982 }
 0x164   : > { %v1517_v24 = vadd.s32 1, %v2870_v19  ;;  %v2037_v27 = vadd.s32 1, %v2890_v21  ;;  %v3639_v34 = vshll.u32 %v1515_v23, 8  ;;  %v3641_v36 = vshll.u32 %v2035_v26, 8 }
 0x165   : > { %v3647_v38 = vadd.s32 1, %v2874_v29 }
 0x166   : > { %vm1518_vm2 = vcmp.gt.s32.totalorder %v1517_v24, 0  ;;  %vm2038_vm3 = vcmp.gt.s32.totalorder %v2037_v27, 0 }
 0x167   : > { %v1519_v31 = vsel %vm1518_vm2, %v1517_v24, 0  ;;  %v2039_v35 = vsel %vm2038_vm3, %v2037_v27, 0  ;;  %vm1622_vm8 = vcmp.gt.s32.totalorder %v3647_v38, 0 }
 0x168   : > { %v1520_v32 = vshrl.u32 %v1519_v31, 5  ;;  %v1521_v33 = vand.u32 31, %v1519_v31  ;;  %v3651_v43 = vshrl.u32 %v2039_v35, 5  ;;  %v2041_v44 = vand.u32 31, %v2039_v35 }
 0x16a   : > { %v1522_v40 = vsub.s32 32, %v1521_v33  ;;  %v1524_v42 = vshll.u32 %v3328_v41, %v1521_v33  ;;  %v1527_v46 = vshll.u32 %v3329_v45, %v1521_v33  ;;  %v1530_v48 = vshll.u32 %v3330_v47, %v1521_v33 }
 0x16b   : > { %v1533_v50 = vshll.u32 %v3331_v49, %v1521_v33  ;;  %v1536_v52 = vshll.u32 %v3332_v51, %v1521_v33  ;;  %vm1539_vm4 = vcmp.lt.s32.totalorder %v1520_v32, 1  ;;  %vm1540_vm5 = vcmp.lt.s32.totalorder %v1520_v32, 2 }
 0x16c   : > { %v1525_v53 = vshrl.u32 %v3329_v45, %v1522_v40  ;;  %v1528_v54 = vshrl.u32 %v3330_v47, %v1522_v40  ;;  %v1531_v55 = vshrl.u32 %v3331_v49, %v1522_v40  ;;  %v1523_v57 = vshrl.u32 %v3328_v41, %v1522_v40 }
 0x16d   : > { %v1534_v0 = vshrl.u32 %v3332_v51, %v1522_v40  ;;  %v1537_v1 = vshrl.u32 %v3333_v63, %v1522_v40  ;;  %v2042_v10 = vsub.s32 32, %v2041_v44  ;;  %vm1541_vm6 = vcmp.lt.s32.totalorder %v1520_v32, 3 }
 0x16e   : > { %v1526_v2 = vor.u32 %v1525_v53, %v1524_v42  ;;  %v1529_v5 = vor.u32 %v1528_v54, %v1527_v46  ;;  %v1532_v8 = vor.u32 %v1531_v55, %v1530_v48  ;;  %vm1542_vm7 = vcmp.lt.s32.totalorder %v1520_v32, 4 }
 0x16f   : > { %v1535_v12 = vor.u32 %v1534_v0, %v1533_v50  ;;  %v1538_v14 = vor.u32 %v1537_v1, %v1536_v52  ;;  %v2044_v23 = vshll.u32 %v3328_v41, %v2041_v44  ;;  %v2045_v27 = vshrl.u32 %v3329_v45, %v2042_v10 }
 0x170   : > { %v1543_v15 = vsel %vm1539_vm4, %v1523_v57, %v1526_v2  ;;  %v1544_v16 = vsel %vm1542_vm7, %v1532_v8, 2102212464  ;;  %v1547_v17 = vsel %vm1539_vm4, %v1526_v2, %v1529_v5  ;;  %v1551_v18 = vsel %vm1539_vm4, %v1529_v5, %v1532_v8 }
 0x171   : > { %v1545_v19 = vsel %vm1541_vm6, %v1529_v5, %v1544_v16  ;;  %v1548_v21 = vsel %vm1542_vm7, %v1535_v12, 920167782  ;;  %v1552_v22 = vsel %vm1542_vm7, %v1538_v14, 1326507024  ;;  %v2047_v29 = vshll.u32 %v3329_v45, %v2041_v44 }
 0x172   : > { %v1549_v24 = vsel %vm1541_vm6, %v1532_v8, %v1548_v21  ;;  %v1553_v26 = vsel %vm1541_vm6, %v1535_v12, %v1552_v22  ;;  %v1546_v31 = vsel %vm1540_vm5, %v1543_v15, %v1545_v19  ;;  %v2048_v40 = vshrl.u32 %v3330_v47, %v2042_v10 }
 0x173   : > { %v1550_v33 = vsel %vm1540_vm5, %v1547_v17, %v1549_v24  ;;  %v1554_v35 = vsel %vm1540_vm5, %v1551_v18, %v1553_v26  ;;  %v2046_v52 = vor.u32 %v2045_v27, %v2044_v23  ;;  %v2050_v54 = vshll.u32 %v3330_v47, %v2041_v44 }
 0x174   : > { %v3675_v42 = vmul.u32.u64.low %v3639_v34, %v1554_v35  ;;  %v3676_v46 = vmul.u32.u64.high %v3639_v34, %v1554_v35, %v3675_v42  ;;  %v3679_v48 = vmul.u32.u64.low %v3639_v34, %v1550_v33  ;;  %v3680_v50 = vmul.u32.u64.high %v3639_v34, %v1550_v33, %v3679_v48 }
 0x175   : > { %v2049_v53 = vor.u32 %v2048_v40, %v2047_v29  ;;  %v2051_v55 = vshrl.u32 %v3331_v49, %v2042_v10  ;;  %v2043_v57 = vshrl.u32 %v3328_v41, %v2042_v10  ;;  %v2053_v32 = vshll.u32 %v3331_v49, %v2041_v44 }
 0x176   : > { %v2054_v0 = vshrl.u32 %v3332_v51, %v2042_v10  ;;  %v2057_v1 = vshrl.u32 %v3333_v63, %v2042_v10  ;;  %v1562_v2 = vmul.u32 %v3639_v34, %v1546_v31  ;;  %v2056_v8 = vshll.u32 %v3332_v51, %v2041_v44 }
 0x177   : > { %v2052_v5 = vor.u32 %v2051_v55, %v2050_v54  ;;  %vm2059_vm9 = vcmp.lt.s32.totalorder %v3651_v43, 1  ;;  %vm1564_vm10 = vc.u32 %v3676_v46, %v3679_v48  ;;  %v1565_v12 = vadd.s32 1, %v3680_v50 }
 0x178   : > { %v2055_v14 = vor.u32 %v2054_v0, %v2053_v32  ;;  %vm2060_vm11 = vcmp.lt.s32.totalorder %v3651_v43, 2  ;;  %v2058_v15 = vor.u32 %v2057_v1, %v2056_v8  ;;  %vm2061_vm12 = vcmp.lt.s32.totalorder %v3651_v43, 3  ;;  %v3720_v1 = vpop.f32.mrb[4].mxu0 }
 0x179   : > { %vm2062_vm13 = vcmp.lt.s32.totalorder %v3651_v43, 4  ;;  %v2067_v10 = vsel %vm2059_vm9, %v2046_v52, %v2049_v53  ;;  %v1566_v34 = vsel %vm1564_vm10, %v1565_v12, %v3680_v50  ;;  %v2071_v44 = vsel %vm2059_vm9, %v2049_v53, %v2052_v5 }
 0x17a   : > { %v2064_v16 = vsel %vm2062_vm13, %v2052_v5, 2102212464  ;;  %v2068_v17 = vsel %vm2062_vm13, %v2055_v14, 920167782  ;;  %v1567_v18 = vadd.s32 %v1566_v34, %v1562_v2  ;;  %v2063_v19 = vsel %vm2059_vm9, %v2043_v57, %v2046_v52 }
 0x17b   : > { %v2069_v21 = vsel %vm2061_vm12, %v2052_v5, %v2068_v17  ;;  %v2072_v22 = vsel %vm2062_vm13, %v2058_v15, 1326507024  ;;  %v2065_v23 = vsel %vm2061_vm12, %v2049_v53, %v2064_v16  ;;  %v1623_v27 = vsel %vm1622_vm8, %v3647_v38, 0 }
 0x17c   : > { %v2070_v24 = vsel %vm2060_vm11, %v2067_v10, %v2069_v21  ;;  %v2073_v26 = vsel %vm2061_vm12, %v2055_v14, %v2072_v22  ;;  %v1568_v29 = vadd.s32 536870912, %v1567_v18  ;;  %v1715_v50 = vand.u32 2147483647, %v3634_v25 }
 0x17d   : > { %v2074_v31 = vsel %vm2060_vm11, %v2071_v44, %v2073_v26  ;;  %v3705_v33 = vmul.u32.u64.low %v3641_v36, %v2070_v24  ;;  %v3706_v35 = vmul.u32.u64.high %v3641_v36, %v2070_v24, %v3705_v33  ;;  %v2066_v53 = vsel %vm2060_vm11, %v2063_v19, %v2065_v23 }
 0x17e   : > { %v3710_v40 = vmul.u32.u64.low %v3641_v36, %v2074_v31  ;;  %v3711_v42 = vmul.u32.u64.high %v3641_v36, %v2074_v31, %v3710_v40  ;;  %v1569_v52 = vshrl.u32 %v1568_v29, 30  ;;  %v1619_v38 = vor.u32 8388608, %v3645_v37 }
 0x17f   : > { %v1625_v54 = vand.u32 31, %v1623_v27  ;;  %v2085_v57 = vadd.s32 1, %v3706_v35  ;;  %v1719_v0 = vshrl.u32 %v1718_v39, 23  ;;  %v2082_v2 = vmul.u32 %v3641_v36, %v2066_v53 }
 0x180   : > { %v1570_v55 = vshll.u32 %v1569_v52, 30  ;;  %vm2084_vm14 = vc.u32 %v3711_v42, %v3705_v33  ;;  %v3727_v43 = vand.u32 8388607, %v1715_v50  ;;  %v3733_v8 = vshll.u32 %v1619_v38, 8 }
 0x181   : > { %v1626_v32 = vsub.s32 32, %v1625_v54  ;;  %v2086_v5 = vsel %vm2084_vm14, %v2085_v57, %v3706_v35  ;;  %v1563_v36 = vadd.s32 %v3679_v48, %v3676_v46  ;;  %v3742_v14 = vshrl.u32 %v1623_v27, 5 }
 0x182   : > { %v3730_v37 = vsub.s32 %v1567_v18, %v1570_v55  ;;  %v2087_v12 = vadd.s32 %v2086_v5, %v2082_v2  ;;  %v2878_v17 = vadd.s32 4294967169, %v1719_v0  ;;  %v1593_v44 = vsub.s32 4, %v1569_v52 }
 0x183   : > { %v1629_v15 = vshrl.u32 %v3329_v45, %v1626_v32  ;;  %v1632_v34 = vshrl.u32 %v3330_v47, %v1626_v32  ;;  %v1635_v16 = vshrl.u32 %v3331_v49, %v1626_v32  ;;  %v1628_v9 = vshll.u32 %v3328_v41, %v1625_v54 }
 0x184   : > { %v1573_v10 = vsub.s32 0, %v3730_v37  ;;  %v2088_v18 = vadd.s32 536870912, %v2087_v12  ;;  %v1723_v19 = vor.u32 8388608, %v3727_v43  ;;  %v1631_v48 = vshll.u32 %v3329_v45, %v1625_v54 }
 0x185   : > { %v1634_v21 = vshll.u32 %v3330_v47, %v1625_v54  ;;  %v1638_v22 = vshrl.u32 %v3332_v51, %v1626_v32  ;;  %v1630_v24 = vor.u32 %v1629_v15, %v1628_v9  ;;  %v1637_v26 = vshll.u32 %v3331_v49, %v1625_v54 }
 0x186   : > { %v2871_v46 = vmin.u32 %v1573_v10, %v3730_v37  ;;  %v2089_v23 = vshrl.u32 %v2088_v18, 30  ;;  %v1641_v27 = vshrl.u32 %v3333_v63, %v1626_v32  ;;  %v1633_v31 = vor.u32 %v1632_v34, %v1631_v48 }
 0x187   : > { %v1636_v35 = vor.u32 %v1635_v16, %v1634_v21  ;;  %v1640_v40 = vshll.u32 %v3332_v51, %v1625_v54  ;;  %v1594_v53 = vsel %vm1509_vm15, %v1593_v44, %v1569_v52  ;;  %v1639_v55 = vor.u32 %v1638_v22, %v1637_v26 }
 0x188   : > { %v1575_v29 = vclz %v2871_v46  ;;  %v2090_v38 = vshll.u32 %v2089_v23, 30  ;;  %vm1643_vm1 = vcmp.lt.s32.totalorder %v3742_v14, 1  ;;  %vm1644_vm2 = vcmp.lt.s32.totalorder %v3742_v14, 2 }
 0x189   : > { %v1642_v0 = vor.u32 %v1641_v27, %v1640_v40  ;;  %vm1646_vm3 = vcmp.lt.s32.totalorder %v3742_v14, 4  ;;  %vm2029_vm4 = vcmp.lt.s32.totalorder %v3615_v4, 0  ;;  %v1627_v5 = vshrl.u32 %v3328_v41, %v1626_v32 }
 0x18a   : > { %v2872_v57 = vadd.s32 4294967294, %v1575_v29  ;;  %v3763_v2 = vsub.s32 %v2087_v12, %v2090_v38  ;;  %vm1645_vm5 = vcmp.lt.s32.totalorder %v3742_v14, 3  ;;  %v1652_v52 = vsel %vm1646_vm3, %v1639_v55, 920167782 }
 0x18b   : > { %v1596_v54 = vsel %vm3737_vm0, 0, %v1594_v53  ;;  %v1651_v15 = vsel %vm1643_vm1, %v1630_v24, %v1633_v31  ;;  %v1653_v10 = vsel %vm1645_vm5, %v1636_v35, %v1652_v52  ;;  %v2113_v16 = vsub.s32 4, %v2089_v23 }
 0x18c   : > { %vm2873_vm6 = vcmp.lt.s32.totalorder %v2872_v57, 0  ;;  %v2093_v12 = vsub.s32 0, %v3763_v2  ;;  %v1655_v32 = vsel %vm1643_vm1, %v1633_v31, %v1636_v35  ;;  %vm3780_vm7 = vcmp.le.f32.partialorder %v2027_v11, 0.7853982 }
 0x18d   : > { %v1578_v34 = vsel %vm2873_vm6, 0, %v2872_v57  ;;  %v1648_v46 = vsel %vm1646_vm3, %v1636_v35, 2102212464  ;;  %v1656_v48 = vsel %vm1646_vm3, %v1642_v0, 1326507024  ;;  %v1654_v26 = vsel %vm1644_vm2, %v1651_v15, %v1653_v10 }
 0x18e   : > { %v1579_v44 = vsub.s32 32, %v1578_v34  ;;  %v1583_v18 = vsub.s32 4294967266, %v1578_v34  ;;  %v1580_v21 = vshll.u32 %v3730_v37, %v1578_v34  ;;  %v2891_v22 = vmin.u32 %v2093_v12, %v3763_v2 }
 0x18f   : > { %v1657_v27 = vsel %vm1645_vm5, %v1639_v55, %v1656_v48  ;;  %v1725_v53 = vadd.s32 1, %v2878_v17  ;;  %v1600_v35 = vadd.s32 3, %v1596_v54  ;;  %v1647_v57 = vsel %vm1643_vm1, %v1627_v5, %v1630_v24 }
 0x190   : > { %v1581_v11 = vshrl.u32 %v1563_v36, %v1579_v44  ;;  %v1584_v29 = vadd.s32 127, %v1583_v18  ;;  %v1658_v40 = vsel %vm1644_vm2, %v1655_v32, %v1657_v27  ;;  %v2095_v38 = vclz %v2891_v22  ;;  %v3804_v36 = vpop.f32.mrb[5].mxu0 }
 0x191   : > { %v1649_v37 = vsel %vm1645_vm5, %v1633_v31, %v1648_v46  ;;  %v3801_v15 = vmul.u32.u64.low %v3733_v8, %v1658_v40  ;;  %v3802_v10 = vmul.u32.u64.high %v3733_v8, %v1658_v40, %v3801_v15  ;;  %vm1726_vm8 = vcmp.gt.s32.totalorder %v1725_v53, 0 }
 0x192   : > { %v1582_v0 = vor.u32 %v1581_v11, %v1580_v21  ;;  %v1585_v52 = vshll.u32 %v1584_v29, 23  ;;  %v2892_v55 = vadd.s32 4294967294, %v2095_v38  ;;  %v2083_v24 = vadd.s32 %v3705_v33, %v3711_v42 }
 0x193   : > { %v3807_v34 = vmul.u32.u64.low %v3733_v8, %v1654_v26  ;;  %v3808_v17 = vmul.u32.u64.high %v3733_v8, %v1654_v26, %v3807_v34  ;;  %v2114_v31 = vsel %vm2029_vm4, %v2113_v16, %v2089_v23  ;;  %v1727_v5 = vsel %vm1726_vm8, %v1725_v53, 0 }
 0x194   : > { %v1586_v54 = vor.u32 4788187, %v1585_v52  ;;  %v3815_v12 = vand.u32 3, %v1600_v35  ;;  %vm2893_vm9 = vcmp.lt.s32.totalorder %v2892_v55, 0  ;;  %v1650_v32 = vsel %vm1644_vm2, %v1647_v57, %v1649_v37 }
 0x195   : > { %v1729_v44 = vand.u32 31, %v1727_v5  ;;  %v1589_v46 = vcvt.s32.f32 %v1582_v0  ;;  %v2098_v48 = vsel %vm2893_vm9, 0, %v2892_v55  ;;  %vm1668_vm10 = vc.u32 %v3802_v10, %v3807_v34 }
 0x196   : > { %v1587_v18 = vand.u32 2147483647, %v1586_v54  ;;  %v2099_v21 = vsub.s32 32, %v2098_v48  ;;  %v2103_v22 = vsub.s32 4294967266, %v2098_v48  ;;  %v2116_v33 = vsel %vm3780_vm7, 0, %v2114_v31 }
 0x197   : > { %v1669_v42 = vadd.s32 1, %v3808_v17  ;;  %v1666_v16 = vmul.u32 %v3733_v8, %v1650_v32  ;;  %v3825_v26 = vshrl.u32 %v1727_v5, 5  ;;  %v1730_v14 = vsub.s32 32, %v1729_v44 }
 0x198   : > { %v1590_v23 = vmul.f32 %v1589_v46, %v1587_v18  ;;  %v2100_v27 = vshll.u32 %v3763_v2, %v2098_v48  ;;  %v2101_v11 = vshrl.u32 %v2083_v24, %v2099_v21  ;;  %v2104_v29 = vadd.s32 127, %v2103_v22 }
 0x199   : > { %v1670_v40 = vsel %vm1668_vm10, %v1669_v42, %v3808_v17  ;;  %v1732_v38 = vshll.u32 %v3328_v41, %v1729_v44  ;;  %v1733_v57 = vshrl.u32 %v3329_v45, %v1730_v14  ;;  %v1735_v52 = vshll.u32 %v3329_v45, %v1729_v44 }
 0x19a   : > { %v1591_v53 = vxor.u32 2147483648, %v1590_v23  ;;  %v1671_v35 = vadd.s32 %v1670_v40, %v1666_v16  ;;  %v2102_v37 = vor.u32 %v2101_v11, %v2100_v27  ;;  %v2105_v0 = vshll.u32 %v2104_v29, 23 }
 0x19b   : > { %v1736_v8 = vshrl.u32 %v3330_v47, %v1730_v14  ;;  %v1738_v55 = vshll.u32 %v3330_v47, %v1729_v44  ;;  %v1739_v17 = vshrl.u32 %v3331_v49, %v1730_v14  ;;  %v1734_v31 = vor.u32 %v1733_v57, %v1732_v38 }
 0x19c   : > { %v1592_v15 = vsel %vm1509_vm15, %v1591_v53, %v1590_v23  ;;  %v1672_v2 = vadd.s32 536870912, %v1671_v35  ;;  %v2106_v24 = vor.u32 4788187, %v2105_v0  ;;  %v1741_v5 = vshll.u32 %v3331_v49, %v1729_v44 }
 0x19d   : > { %v1595_v54 = vsel %vm3737_vm0, %v3613_v3, %v1592_v15  ;;  %v2109_v32 = vcvt.s32.f32 %v2102_v37  ;;  %v1742_v46 = vshrl.u32 %v3332_v51, %v1730_v14  ;;  %v1737_v21 = vor.u32 %v1736_v8, %v1735_v52 }
 0x19e   : > { %3198 = vcosq.f32 %v1595_v54  ;;  %v3841_v18 = vshrl.u32 %v1672_v2, 30  ;;  %v2107_v48 = vand.u32 2147483647, %v2106_v24  ;;  %v1745_v22 = vshrl.u32 %v3333_v63, %v1730_v14 }
 0x19f   : > { %3200 = vsinq.f32 %v1595_v54  ;;  %v1743_v23 = vor.u32 %v1742_v46, %v1741_v5  ;;  %v1740_v16 = vor.u32 %v1739_v17, %v1738_v55  ;;  %v1744_v27 = vshll.u32 %v3332_v51, %v1729_v44 }
 0x1a0   : > { %v1674_v42 = vshll.u32 %v3841_v18, 30  ;;  %v2110_v39 = vmul.f32 %v2109_v32, %v2107_v48  ;;  %v2120_v11 = vadd.s32 3, %v2116_v33  ;;  %vm1747_vm11 = vcmp.lt.s32.totalorder %v3825_v26, 1 }
 0x1a1   : > { %v3852_v40 = vshll.u32 %v1723_v19, 8  ;;  %vm1603_vm12 = vcmp.eq.s32.totalorder %v3815_v12, 0  ;;  %v1746_v38 = vor.u32 %v1745_v22, %v1744_v27  ;;  %vm1750_vm13 = vcmp.lt.s32.totalorder %v3825_v26, 4 }
 0x1a2   : > { %v3847_v29 = vsub.s32 %v1671_v35, %v1674_v42  ;;  %v2111_v53 = vxor.u32 2147483648, %v2110_v39  ;;  %v1755_v57 = vsel %vm1747_vm11, %v1734_v31, %v1737_v21  ;;  %vm1602_vm14 = vcmp.lt.s32.totalorder %v3815_v12, 2 }
 0x1a3   : > { %v1731_v33 = vshrl.u32 %v3328_v41, %v1730_v14  ;;  %vm1749_vm15 = vcmp.lt.s32.totalorder %v3825_v26, 3  ;;  %v1756_v43 = vsel %vm1750_vm13, %v1743_v23, 920167782  ;;  %vm1599_vm0 = vweird.f32 %v3613_v3 }
 0x1a4   : > { %v1677_v44 = vsub.s32 0, %v3847_v29  ;;  %v2112_v19 = vsel %vm2029_vm4, %v2111_v53, %v2110_v39  ;;  %vm1613_vm1 = vcmp.lt.s32.totalorder %v3617_v7, 0  ;;  %vm1748_vm2 = vcmp.lt.s32.totalorder %v3825_v26, 2 }
 0x1a5   : > { %v1752_v35 = vsel %vm1750_vm13, %v1740_v16, 2102212464  ;;  %v1757_v14 = vsel %vm1749_vm15, %v1740_v16, %v1756_v43  ;;  %v2115_v37 = vsel %vm3780_vm7, %v3615_v4, %v2112_v19  ;;  %v1759_v8 = vsel %vm1747_vm11, %v1737_v21, %v1740_v16 }
 0x1a6   : > { %v2875_v0 = vmin.u32 %v1677_v44, %v3847_v29  ;;  %v1758_v52 = vsel %vm1748_vm2, %v1755_v57, %v1757_v14  ;;  %3202 = vcosq.f32 %v2115_v37  ;;  %v1760_v15 = vsel %vm1750_vm13, %v1746_v38, 1326507024 }
 0x1a7   : > { %v3885_v2 = vmul.u32.u64.low %v3852_v40, %v1758_v52  ;;  %v3886_v55 = vmul.u32.u64.high %v3852_v40, %v1758_v52, %v3885_v2  ;;  %vm1606_vm3 = vcmp.eq.s32.totalorder %v3815_v12, 2  ;;  %3204 = vsinq.f32 %v2115_v37 }
 0x1a8   : > { %v3199_v17 = vpop.eup %3198  ;;  %v1679_v9 = vclz %v2875_v0  ;;  %v1697_v54 = vsub.s32 4, %v3841_v18  ;;  %vm3897_vm4 = vcmp.le.f32.partialorder %v1611_v28, 0.7853982  ;;  %v1751_v46 = vsel %vm1747_vm11, %v1731_v33, %v1734_v31 }
 0x1a9   : > { %v3201_v24 = vpop.eup %3200  ;;  %v1607_v5 = vxor.u32 2147483648, %v3199_v17  ;;  %v1753_v48 = vsel %vm1749_vm15, %v1737_v21, %v1752_v35  ;;  %v1761_v22 = vsel %vm1749_vm15, %v1743_v23, %v1760_v15  ;;  %v3911_v28 = vadd.f32 %v3623_v6, %v3601_v56 }
 0x1aa   : > { %v1604_v42 = vxor.u32 2147483648, %v3201_v24  ;;  %v2876_v39 = vadd.s32 4294967294, %v1679_v9  ;;  %v1762_v16 = vsel %vm1748_vm2, %v1759_v8, %v1761_v22  ;;  %v2121_v53 = vand.u32 3, %v2120_v11 }
 0x1ab   : > { %v1608_v27 = vsel %vm1606_vm3, %v1607_v5, %v3201_v24  ;;  %v3914_v31 = vmul.u32.u64.low %v3852_v40, %v1762_v16  ;;  %v3915_v38 = vmul.u32.u64.high %v3852_v40, %v1762_v16, %v3914_v31  ;;  %v1754_v23 = vsel %vm1748_vm2, %v1751_v46, %v1753_v48  ;;  %v3951_v24 = vpop.permute.xlu1 %290 }
 0x1ac   : > { %v1605_v21 = vsel %vm1603_vm12, %v3199_v17, %v1604_v42  ;;  %vm2877_vm5 = vcmp.lt.s32.totalorder %v2876_v39, 0  ;;  %v1773_v57 = vadd.s32 1, %v3886_v55  ;;  %v1667_v6 = vadd.s32 %v3807_v34, %v3802_v10 }
 0x1ad   : > { %v1609_v56 = vsel %vm1602_vm14, %v1605_v21, %v1608_v27  ;;  %v1682_v11 = vsel %vm2877_vm5, 0, %v2876_v39  ;;  %v1822_v44 = vand.u32 2139095040, %v3911_v28  ;;  %vm2119_vm6 = vweird.f32 %v3615_v4 }
 0x1ae   : > { %v1610_v33 = vsel %vm1599_vm0, nan, %v1609_v56  ;;  %v1683_v43 = vsub.s32 32, %v1682_v11  ;;  %v1687_v19 = vsub.s32 4294967266, %v1682_v11  ;;  %v1698_v26 = vsel %vm1613_vm1, %v1697_v54, %v3841_v18 }
 0x1af   : > { %2755 = vst [vmem:[%s3934_s5] sm:$0xff] %v1610_v33  ;;  %v1770_v10 = vmul.u32 %v3852_v40, %v1754_v23  ;;  %vm1772_vm7 = vc.u32 %v3915_v38, %v3885_v2  ;;  %v1819_v3 = vand.u32 2147483647, %v3911_v28  ;;  %v1823_v34 = vshrl.u32 %v1822_v44, 23 }
 0x1b0   : > { %v1684_v12 = vshll.u32 %v3847_v29, %v1682_v11  ;;  %v1685_v35 = vshrl.u32 %v1667_v6, %v1683_v43  ;;  %v1688_v14 = vadd.s32 127, %v1687_v19  ;;  %v1774_v37 = vsel %vm1772_vm7, %v1773_v57, %v3886_v55  ;;  %v3203_v0 = vpop.eup %3202  ;;  %v3949_v29 = vpop.f32.mrb[6].mxu0 }
 0x1b1   : > { %vm2126_vm8 = vcmp.eq.s32.totalorder %v2121_v53, 2  ;;  %v1775_v18 = vadd.s32 %v1774_v37, %v1770_v10  ;;  %v2882_v52 = vadd.s32 4294967169, %v1823_v34  ;;  %v3945_v8 = vadd.f32 %v3632_v20, %v3603_v58  ;;  %v3205_v40 = vpop.eup %3204  ;;  %v3962_v11 = vpop.permute.xlu1 %295 }
 0x1b2   : > { %v2127_v15 = vxor.u32 2147483648, %v3203_v0  ;;  %v1686_v17 = vor.u32 %v1685_v35, %v1684_v12  ;;  %v1689_v9 = vshll.u32 %v1688_v14, 23  ;;  %v1700_v54 = vsel %vm3897_vm4, 0, %v1698_v26 }
 0x1b3   : > { %v2124_v55 = vxor.u32 2147483648, %v3205_v40  ;;  %v1776_v5 = vadd.s32 536870912, %v1775_v18  ;;  %v1826_v46 = vand.u32 8388607, %v1819_v3  ;;  %v1829_v48 = vadd.s32 1, %v2882_v52 }
 0x1b4   : > { %vm2122_vm9 = vcmp.lt.s32.totalorder %v2121_v53, 2  ;;  %vm2123_vm10 = vcmp.eq.s32.totalorder %v2121_v53, 0  ;;  %v2128_v58 = vsel %vm2126_vm8, %v2127_v15, %v3205_v40  ;;  %v1690_v20 = vor.u32 4788187, %v1689_v9 }
 0x1b5   : > { %v2125_v22 = vsel %vm2123_vm10, %v3203_v0, %v2124_v55  ;;  %v1704_v42 = vadd.s32 3, %v1700_v54  ;;  %v3956_v39 = vshrl.u32 %v1776_v5, 30  ;;  %vm1830_vm11 = vcmp.gt.s32.totalorder %v1829_v48, 0 }
 0x1b6   : > { %v2129_v16 = vsel %vm2122_vm9, %v2125_v22, %v2128_v58  ;;  %v1691_v27 = vand.u32 2147483647, %v1690_v20  ;;  %v1693_v31 = vcvt.s32.f32 %v1686_v17  ;;  %v1831_v21 = vsel %vm1830_vm11, %v1829_v48, 0 }
 0x1b7   : > { %v2130_v23 = vsel %vm2119_vm6, nan, %v2129_v16  ;;  %v1778_v57 = vshll.u32 %v3956_v39, 30  ;;  %v1827_v56 = vor.u32 8388608, %v1826_v46  ;;  %v1833_v53 = vand.u32 31, %v1831_v21 }
 0x1b8   : > { %2760 = vst [vmem:[%s3934_s5 + $0x28] sm:$0xff] %v2130_v23  ;;  %v1694_v6 = vmul.f32 %v1693_v31, %v1691_v27  ;;  %v3968_v33 = vadd.f32 %v3605_v59, %v3951_v24  ;;  %v3970_v19 = vand.u32 3, %v1704_v42  ;;  %v3974_v4 = vadd.f32 %v3625_v13, %v3962_v11 }
 0x1b9   : > { %v3964_v44 = vsub.s32 %v1775_v18, %v1778_v57  ;;  %v1834_v26 = vsub.s32 32, %v1833_v53  ;;  %v1771_v10 = vadd.s32 %v3885_v2, %v3915_v38  ;;  %v3979_v12 = vshrl.u32 %v1831_v21, 5 }
 0x1ba   : > { %v1695_v43 = vxor.u32 2147483648, %v1694_v6  ;;  %v3981_v35 = vshll.u32 %v1827_v56, 8  ;;  %v1836_v14 = vshll.u32 %v3328_v41, %v1833_v53  ;;  %v1839_v38 = vshll.u32 %v3329_v45, %v1833_v53  ;;  %v4018_v56 = vpop.f32.mrb[7].mxu0 }
 0x1bb   : > { %v1781_v34 = vsub.s32 0, %v3964_v44  ;;  %v1837_v37 = vshrl.u32 %v3329_v45, %v1834_v26  ;;  %v1840_v0 = vshrl.u32 %v3330_v47, %v1834_v26  ;;  %v1843_v18 = vshrl.u32 %v3331_v49, %v1834_v26 }
 0x1bc   : > { %v1696_v59 = vsel %vm1613_vm1, %v1695_v43, %v1694_v6  ;;  %v1801_v52 = vsub.s32 4, %v3956_v39  ;;  %v1842_v40 = vshll.u32 %v3330_v47, %v1833_v53  ;;  %v2654_v15 = vand.u32 2139095040, %v3974_v4 }
 0x1bd   : > { %v1699_v13 = vsel %vm3897_vm4, %v3617_v7, %v1696_v59  ;;  %v2879_v2 = vmin.u32 %v1781_v34, %v3964_v44  ;;  %v1838_v9 = vor.u32 %v1837_v37, %v1836_v14  ;;  %v1841_v54 = vor.u32 %v1840_v0, %v1839_v38 }
 0x1be   : > { %3206 = vcosq.f32 %v1699_v13  ;;  %v1844_v55 = vor.u32 %v1843_v18, %v1842_v40  ;;  %v1845_v32 = vshll.u32 %v3331_v49, %v1833_v53  ;;  %v1846_v5 = vshrl.u32 %v3332_v51, %v1834_v26 }
 0x1bf   : > { %3208 = vsinq.f32 %v1699_v13  ;;  %v1783_v17 = vclz %v2879_v2  ;;  %vm1851_vm12 = vcmp.lt.s32.totalorder %v3979_v12, 1  ;;  %v1848_v48 = vshll.u32 %v3332_v51, %v1833_v53 }
 0x1c0   : > { %v1849_v58 = vshrl.u32 %v3333_v63, %v1834_v26  ;;  %vm1852_vm13 = vcmp.lt.s32.totalorder %v3979_v12, 2  ;;  %vm1710_vm14 = vcmp.eq.s32.totalorder %v3970_v19, 2  ;;  %v1835_v20 = vshrl.u32 %v3328_v41, %v1834_v26 }
 0x1c1   : > { %v2880_v46 = vadd.s32 4294967294, %v1783_v17  ;;  %v1847_v22 = vor.u32 %v1846_v5, %v1845_v32  ;;  %vm1853_vm15 = vcmp.lt.s32.totalorder %v3979_v12, 3  ;;  %vm1854_vm0 = vcmp.lt.s32.totalorder %v3979_v12, 4 }
 0x1c2   : > { %vm1707_vm1 = vcmp.eq.s32.totalorder %v3970_v19, 0  ;;  %vm1717_vm2 = vcmp.lt.s32.totalorder %v3634_v25, 0  ;;  %v1850_v42 = vor.u32 %v1849_v58, %v1848_v48  ;;  %v1856_v16 = vsel %vm1854_vm0, %v1844_v55, 2102212464 }
 0x1c3   : > { %vm2881_vm3 = vcmp.lt.s32.totalorder %v2880_v46, 0  ;;  %v1859_v27 = vsel %vm1851_vm12, %v1838_v9, %v1841_v54  ;;  %vm1706_vm4 = vcmp.lt.s32.totalorder %v3970_v19, 2  ;;  %v1855_v21 = vsel %vm1851_vm12, %v1835_v20, %v1838_v9 }
 0x1c4   : > { %v1786_v31 = vsel %vm2881_vm3, 0, %v2880_v46  ;;  %v1860_v23 = vsel %vm1854_vm0, %v1847_v22, 920167782  ;;  %v2655_v57 = vshrl.u32 %v2654_v15, 23  ;;  %vm1703_vm5 = vweird.f32 %v3617_v7 }
 0x1c5   : > { %v1787_v6 = vsub.s32 32, %v1786_v31  ;;  %v1791_v53 = vsub.s32 4294967266, %v1786_v31  ;;  %v1861_v43 = vsel %vm1853_vm15, %v1844_v55, %v1860_v23  ;;  %v1863_v26 = vsel %vm1851_vm12, %v1841_v54, %v1844_v55 }
 0x1c6   : > { %vm4027_vm6 = vcmp.le.f32.partialorder %v1715_v50, 0.7853982  ;;  %v1857_v59 = vsel %vm1853_vm15, %v1841_v54, %v1856_v16  ;;  %v1862_v14 = vsel %vm1852_vm13, %v1859_v27, %v1861_v43  ;;  %v1864_v37 = vsel %vm1854_vm0, %v1850_v42, 1326507024 }
 0x1c7   : > { %v2914_v0 = vadd.s32 4294967169, %v2655_v57  ;;  %v1788_v13 = vshll.u32 %v3964_v44, %v1786_v31  ;;  %v1789_v2 = vshrl.u32 %v1771_v10, %v1787_v6  ;;  %v1792_v38 = vadd.s32 127, %v1791_v53 }
 0x1c8   : > { %v1865_v50 = vsel %vm1853_vm15, %v1847_v22, %v1864_v37  ;;  %v3207_v18 = vpop.eup %3206  ;;  %v4043_v15 = vmul.u32.u64.low %v3981_v35, %v1862_v14  ;;  %v4044_v17 = vmul.u32.u64.high %v3981_v35, %v1862_v14, %v4043_v15  ;;  %v2651_v44 = vand.u32 2147483647, %v3974_v4 }
 0x1c9   : > { %v1866_v40 = vsel %vm1852_vm13, %v1863_v26, %v1865_v50  ;;  %v2661_v9 = vadd.s32 1, %v2914_v0  ;;  %v3209_v54 = vpop.eup %3208  ;;  %v1711_v55 = vxor.u32 2147483648, %v3207_v18  ;;  %v1790_v32 = vor.u32 %v1789_v2, %v1788_v13 }
 0x1ca   : > { %v1793_v5 = vshll.u32 %v1792_v38, 23  ;;  %v1708_v10 = vxor.u32 2147483648, %v3209_v54  ;;  %v4049_v46 = vmul.u32.u64.low %v3981_v35, %v1866_v40  ;;  %v4050_v48 = vmul.u32.u64.high %v3981_v35, %v1866_v40, %v4049_v46 }
 0x1cb   : > { %vm2662_vm7 = vcmp.gt.s32.totalorder %v2661_v9, 0  ;;  %v1712_v58 = vsel %vm1710_vm14, %v1711_v55, %v3209_v54  ;;  %v1858_v22 = vsel %vm1852_vm13, %v1855_v21, %v1857_v59  ;;  %v1802_v27 = vsel %vm1717_vm2, %v1801_v52, %v3956_v39 }
 0x1cc   : > { %v1794_v20 = vor.u32 4788187, %v1793_v5  ;;  %v2663_v42 = vsel %vm2662_vm7, %v2661_v9, 0  ;;  %v1709_v16 = vsel %vm1707_vm1, %v3207_v18, %v1708_v10  ;;  %v1877_v31 = vadd.s32 1, %v4044_v17 }
 0x1cd   : > { %v2665_v23 = vand.u32 31, %v2663_v42  ;;  %v1713_v57 = vsel %vm1706_vm4, %v1709_v16, %v1712_v58  ;;  %v1797_v53 = vcvt.s32.f32 %v1790_v32  ;;  %v2658_v12 = vand.u32 8388607, %v2651_v44 }
 0x1ce   : > { %v1795_v6 = vand.u32 2147483647, %v1794_v20  ;;  %v1714_v21 = vsel %vm1703_vm5, nan, %v1713_v57  ;;  %v1874_v43 = vmul.u32 %v3981_v35, %v1858_v22  ;;  %vm1876_vm8 = vc.u32 %v4050_v48, %v4043_v15 }
 0x1cf   : > { %v2666_v39 = vsub.s32 32, %v2665_v23  ;;  %2756 = vst [vmem:[%s3934_s5 + $0x8] sm:$0xff] %v1714_v21  ;;  %v1804_v19 = vsel %vm4027_vm6, 0, %v1802_v27  ;;  %v1878_v26 = vsel %vm1876_vm8, %v1877_v31, %v4044_v17  ;;  %v2664_v59 = vshrl.u32 %v2663_v42, 5 }
 0x1d0   : > { %v1798_v52 = vmul.f32 %v1797_v53, %v1795_v6  ;;  %v1879_v14 = vadd.s32 %v1878_v26, %v1874_v43  ;;  %v2668_v37 = vshll.u32 %v3328_v41, %v2665_v23  ;;  %v2671_v13 = vshll.u32 %v3329_v45, %v2665_v23 }
 0x1d1   : > { %v2669_v7 = vshrl.u32 %v3329_v45, %v2666_v39  ;;  %v2672_v0 = vshrl.u32 %v3330_v47, %v2666_v39  ;;  %v2674_v2 = vshll.u32 %v3330_v47, %v2665_v23  ;;  %v2675_v38 = vshrl.u32 %v3331_v49, %v2666_v39 }
 0x1d2   : > { %v1799_v35 = vxor.u32 2147483648, %v1798_v52  ;;  %v1880_v50 = vadd.s32 536870912, %v1879_v14  ;;  %v2677_v40 = vshll.u32 %v3331_v49, %v2665_v23  ;;  %v2678_v17 = vshrl.u32 %v3332_v51, %v2666_v39 }
 0x1d3   : > { %v2670_v18 = vor.u32 %v2669_v7, %v2668_v37  ;;  %v2673_v54 = vor.u32 %v2672_v0, %v2671_v13  ;;  %v2676_v55 = vor.u32 %v2675_v38, %v2674_v2  ;;  %v2681_v32 = vshrl.u32 %v3333_v63, %v2666_v39 }
 0x1d4   : > { %v1800_v9 = vsel %vm1717_vm2, %v1799_v35, %v1798_v52  ;;  %v1881_v10 = vshrl.u32 %v1880_v50, 30  ;;  %v2679_v46 = vor.u32 %v2678_v17, %v2677_v40  ;;  %v2680_v58 = vshll.u32 %v3332_v51, %v2665_v23 }
 0x1d5   : > { %v1803_v5 = vsel %vm4027_vm6, %v3634_v25, %v1800_v9  ;;  %v1808_v20 = vadd.s32 3, %v1804_v19  ;;  %v2659_v22 = vor.u32 8388608, %v2658_v12  ;;  %vm2683_vm9 = vcmp.lt.s32.totalorder %v2664_v59, 1 }
 0x1d6   : > { %3210 = vcosq.f32 %v1803_v5  ;;  %v1882_v42 = vshll.u32 %v1881_v10, 30  ;;  %v2682_v16 = vor.u32 %v2681_v32, %v2680_v58  ;;  %vm2686_vm10 = vcmp.lt.s32.totalorder %v2664_v59, 4 }
 0x1d7   : > { %3212 = vsinq.f32 %v1803_v5  ;;  %v2667_v27 = vshrl.u32 %v3328_v41, %v2666_v39  ;;  %vm2685_vm11 = vcmp.lt.s32.totalorder %v2664_v59, 3  ;;  %v2691_v31 = vsel %vm2683_vm9, %v2670_v18, %v2673_v54 }
 0x1d8   : > { %v2692_v34 = vsel %vm2686_vm10, %v2679_v46, 920167782  ;;  %v4095_v57 = vsub.s32 %v1879_v14, %v1882_v42  ;;  %vm2684_vm12 = vcmp.lt.s32.totalorder %v2664_v59, 2  ;;  %v2688_v23 = vsel %vm2686_vm10, %v2676_v55, 2102212464 }
 0x1d9   : > { %v2693_v6 = vsel %vm2685_vm11, %v2676_v55, %v2692_v34  ;;  %v1905_v53 = vsub.s32 4, %v1881_v10  ;;  %v2695_v21 = vsel %vm2683_vm9, %v2673_v54, %v2676_v55  ;;  %v2699_v43 = vshll.u32 %v2659_v22, 8 }
 0x1da   : > { %v2694_v12 = vsel %vm2684_vm12, %v2691_v31, %v2693_v6  ;;  %v1809_v52 = vand.u32 3, %v1808_v20  ;;  %v1885_v39 = vsub.s32 0, %v4095_v57  ;;  %v2687_v19 = vsel %vm2683_vm9, %v2667_v27, %v2670_v18 }
 0x1db   : > { %v2696_v26 = vsel %vm2686_vm10, %v2682_v16, 1326507024  ;;  %v2689_v14 = vsel %vm2685_vm11, %v2673_v54, %v2688_v23  ;;  %v4106_v7 = vmul.u32.u64.low %v2699_v43, %v2694_v12  ;;  %v4107_v0 = vmul.u32.u64.high %v2699_v43, %v2694_v12, %v4106_v7 }
 0x1dc   : > { %v2697_v37 = vsel %vm2685_vm11, %v2679_v46, %v2696_v26  ;;  %vm1807_vm13 = vweird.f32 %v3634_v25  ;;  %vm4112_vm14 = vcmp.le.f32.partialorder %v1819_v3, 0.7853982  ;;  %vm1821_vm15 = vcmp.lt.s32.totalorder %v3911_v28, 0 }
 0x1dd   : > { %v2883_v13 = vmin.u32 %v1885_v39, %v4095_v57  ;;  %v2698_v2 = vsel %vm2684_vm12, %v2695_v21, %v2697_v37  ;;  %v1906_v38 = vsel %vm1821_vm15, %v1905_v53, %v1881_v10  ;;  %v1926_v40 = vand.u32 2139095040, %v3945_v8 }
 0x1de   : > { %v4121_v50 = vmul.u32.u64.low %v2699_v43, %v2698_v2  ;;  %v4122_v18 = vmul.u32.u64.high %v2699_v43, %v2698_v2, %v4121_v50  ;;  %vm1810_vm0 = vcmp.lt.s32.totalorder %v1809_v52, 2  ;;  %v2690_v3 = vsel %vm2684_vm12, %v2687_v19, %v2689_v14 }
 0x1df   : > { %v1887_v17 = vclz %v2883_v13  ;;  %v1923_v9 = vand.u32 2147483647, %v3945_v8  ;;  %vm1811_vm1 = vcmp.eq.s32.totalorder %v1809_v52, 0  ;;  %vm1814_vm2 = vcmp.eq.s32.totalorder %v1809_v52, 2 }
 0x1e0   : > { %v3211_v54 = vpop.eup %3210  ;;  %v2709_v55 = vadd.s32 1, %v4107_v0  ;;  %v1927_v32 = vshrl.u32 %v1926_v40, 23  ;;  %v1908_v58 = vsel %vm4112_vm14, 0, %v1906_v38  ;;  %v4132_v20 = vadd.f32 %v3968_v33, %v3720_v1 }
 0x1e1   : > { %v3213_v5 = vpop.eup %3212  ;;  %v1815_v46 = vxor.u32 2147483648, %v3211_v54  ;;  %v2884_v10 = vadd.s32 4294967294, %v1887_v17  ;;  %v2706_v22 = vmul.u32 %v2699_v43, %v2690_v3  ;;  %vm2708_vm3 = vc.u32 %v4122_v18, %v4106_v7 }
 0x1e2   : > { %v1812_v59 = vxor.u32 2147483648, %v3213_v5  ;;  %v2886_v42 = vadd.s32 4294967169, %v1927_v32  ;;  %v2710_v27 = vsel %vm2708_vm3, %v2709_v55, %v4107_v0  ;;  %v1930_v31 = vand.u32 8388607, %v1923_v9 }
 0x1e3   : > { %v1816_v16 = vsel %vm1814_vm2, %v1815_v46, %v3213_v5  ;;  %vm2885_vm4 = vcmp.lt.s32.totalorder %v2884_v10, 0  ;;  %v2711_v6 = vadd.s32 %v2710_v27, %v2706_v22  ;;  %v1875_v33 = vadd.s32 %v4043_v15, %v4050_v48 }
 0x1e4   : > { %v1813_v34 = vsel %vm1811_vm1, %v3211_v54, %v1812_v59  ;;  %v1890_v23 = vsel %vm2885_vm4, 0, %v2884_v10  ;;  %v1933_v53 = vadd.s32 1, %v2886_v42  ;;  %v1912_v39 = vadd.s32 3, %v1908_v58 }
 0x1e5   : > { %v1817_v1 = vsel %vm1810_vm0, %v1813_v34, %v1816_v16  ;;  %v1891_v12 = vsub.s32 32, %v1890_v23  ;;  %v1895_v21 = vsub.s32 4294967266, %v1890_v23  ;;  %v2712_v19 = vadd.s32 536870912, %v2711_v6 }
 0x1e6   : > { %v1818_v43 = vsel %vm1807_vm13, nan, %v1817_v1  ;;  %vm1934_vm5 = vcmp.gt.s32.totalorder %v1933_v53, 0  ;;  %v1892_v26 = vshll.u32 %v4095_v57, %v1890_v23  ;;  %v1931_v52 = vor.u32 8388608, %v1930_v31 }
 0x1e7   : > { %2757 = vst [vmem:[%s3934_s5 + $0x10] sm:$0xff] %v1818_v43  ;;  %v1893_v14 = vshrl.u32 %v1875_v33, %v1891_v12  ;;  %v1896_v37 = vadd.s32 127, %v1895_v21  ;;  %v1935_v0 = vsel %vm1934_vm5, %v1933_v53, 0  ;;  %v2713_v13 = vshrl.u32 %v2712_v19, 30 }
 0x1e8   : > { %v1937_v2 = vand.u32 31, %v1935_v0  ;;  %vm2653_vm6 = vcmp.lt.s32.totalorder %v3974_v4, 0  ;;  %v4147_v40 = vand.u32 3, %v1912_v39  ;;  %v2707_v17 = vadd.s32 %v4106_v7, %v4122_v18 }
 0x1e9   : > { %v1894_v38 = vor.u32 %v1893_v14, %v1892_v26  ;;  %v1897_v50 = vshll.u32 %v1896_v37, 23  ;;  %v2714_v15 = vshll.u32 %v2713_v13, 30  ;;  %v4152_v57 = vadd.f32 %v3637_v30, %v3951_v24 }
 0x1ea   : > { %v1938_v48 = vsub.s32 32, %v1937_v2  ;;  %v1936_v54 = vshrl.u32 %v1935_v0, 5  ;;  %v4157_v32 = vshll.u32 %v1931_v52, 8  ;;  %v2737_v7 = vsub.s32 4, %v2713_v13 }
 0x1eb   : > { %v1898_v25 = vor.u32 4788187, %v1897_v50  ;;  %v4154_v3 = vsub.s32 %v2711_v6, %v2714_v15  ;;  %v1901_v46 = vcvt.s32.f32 %v1894_v38  ;;  %v1940_v18 = vshll.u32 %v3328_v41, %v1937_v2 }
 0x1ec   : > { %v1941_v55 = vshrl.u32 %v3329_v45, %v1938_v48  ;;  %v1944_v10 = vshrl.u32 %v3330_v47, %v1938_v48  ;;  %v1947_v58 = vshrl.u32 %v3331_v49, %v1938_v48  ;;  %v1943_v30 = vshll.u32 %v3329_v45, %v1937_v2 }
 0x1ed   : > { %v1899_v5 = vand.u32 2147483647, %v1898_v25  ;;  %v2717_v59 = vsub.s32 0, %v4154_v3  ;;  %v1946_v42 = vshll.u32 %v3330_v47, %v1937_v2  ;;  %v1949_v16 = vshll.u32 %v3331_v49, %v1937_v2 }
 0x1ee   : > { %v1950_v27 = vshrl.u32 %v3332_v51, %v1938_v48  ;;  %v1942_v34 = vor.u32 %v1941_v55, %v1940_v18  ;;  %v1945_v23 = vor.u32 %v1944_v10, %v1943_v30  ;;  %v1953_v6 = vshrl.u32 %v3333_v63, %v1938_v48 }
 0x1ef   : > { %v1902_v22 = vmul.f32 %v1901_v46, %v1899_v5  ;;  %v2915_v31 = vmin.u32 %v2717_v59, %v4154_v3  ;;  %v1948_v1 = vor.u32 %v1947_v58, %v1946_v42  ;;  %v1952_v12 = vshll.u32 %v3332_v51, %v1937_v2 }
 0x1f0   : > { %v1951_v33 = vor.u32 %v1950_v27, %v1949_v16  ;;  %v2738_v43 = vsel %vm2653_vm6, %v2737_v7, %v2713_v13  ;;  %v1939_v39 = vshrl.u32 %v3328_v41, %v1938_v48  ;;  %v2342_v19 = vand.u32 2139095040, %v4152_v57 }
 0x1f1   : > { %v1903_v53 = vxor.u32 2147483648, %v1902_v22  ;;  %v2719_v21 = vclz %v2915_v31  ;;  %v1954_v14 = vor.u32 %v1953_v6, %v1952_v12  ;;  %vm1955_vm7 = vcmp.lt.s32.totalorder %v1936_v54, 1 }
 0x1f2   : > { %vm1956_vm8 = vcmp.lt.s32.totalorder %v1936_v54, 2  ;;  %vm1957_vm9 = vcmp.lt.s32.totalorder %v1936_v54, 3  ;;  %vm1958_vm10 = vcmp.lt.s32.totalorder %v1936_v54, 4  ;;  %v1963_v13 = vsel %vm1955_vm7, %v1942_v34, %v1945_v23 }
 0x1f3   : > { %v1904_v26 = vsel %vm1821_vm15, %v1903_v53, %v1902_v22  ;;  %v2916_v0 = vadd.s32 4294967294, %v2719_v21  ;;  %v1960_v52 = vsel %vm1958_vm10, %v1948_v1, 2102212464  ;;  %v1964_v2 = vsel %vm1958_vm10, %v1951_v33, 920167782 }
 0x1f4   : > { %v1907_v37 = vsel %vm4112_vm14, %v3911_v28, %v1904_v26  ;;  %v1959_v38 = vsel %vm1955_vm7, %v1939_v39, %v1942_v34  ;;  %v1965_v50 = vsel %vm1957_vm9, %v1948_v1, %v1964_v2  ;;  %v1967_v35 = vsel %vm1955_vm7, %v1945_v23, %v1948_v1 }
 0x1f5   : > { %3214 = vcosq.f32 %v1907_v37  ;;  %vm2917_vm11 = vcmp.lt.s32.totalorder %v2916_v0, 0  ;;  %v1966_v48 = vsel %vm1956_vm8, %v1963_v13, %v1965_v50  ;;  %v1968_v25 = vsel %vm1958_vm10, %v1954_v14, 1326507024 }
 0x1f6   : > { %3216 = vsinq.f32 %v1907_v37  ;;  %v2722_v15 = vsel %vm2917_vm11, 0, %v2916_v0  ;;  %v1961_v46 = vsel %vm1957_vm9, %v1945_v23, %v1960_v52  ;;  %v1969_v10 = vsel %vm1957_vm9, %v1951_v33, %v1968_v25 }
 0x1f7   : > { %v2723_v55 = vsub.s32 32, %v2722_v15  ;;  %v2727_v5 = vsub.s32 4294967266, %v2722_v15  ;;  %v2724_v58 = vshll.u32 %v4154_v3, %v2722_v15  ;;  %v1970_v59 = vsel %vm1956_vm8, %v1967_v35, %v1969_v10 }
 0x1f8   : > { %v4189_v7 = vmul.u32.u64.low %v4157_v32, %v1966_v48  ;;  %v4190_v18 = vmul.u32.u64.high %v4157_v32, %v1966_v48, %v4189_v7  ;;  %v4194_v42 = vmul.u32.u64.low %v4157_v32, %v1970_v59  ;;  %v4195_v16 = vmul.u32.u64.high %v4157_v32, %v1970_v59, %v4194_v42 }
 0x1f9   : > { %v2725_v30 = vshrl.u32 %v2707_v17, %v2723_v55  ;;  %v2728_v22 = vadd.s32 127, %v2727_v5  ;;  %vm4199_vm12 = vcmp.le.f32.partialorder %v2651_v44, 0.7853982  ;;  %v1962_v3 = vsel %vm1956_vm8, %v1959_v38, %v1961_v46 }
 0x1fa   : > { %v2343_v31 = vshrl.u32 %v2342_v19, 23  ;;  %v4206_v34 = vadd.f32 %v3607_v60, %v3951_v24  ;;  %v2740_v6 = vsel %vm4199_vm12, 0, %v2738_v43  ;;  %v1981_v53 = vadd.s32 1, %v4190_v18 }
 0x1fb   : > { %v2726_v23 = vor.u32 %v2725_v30, %v2724_v58  ;;  %v2729_v17 = vshll.u32 %v2728_v22, 23  ;;  %v2339_v1 = vand.u32 2147483647, %v4152_v57  ;;  %v2134_v33 = vand.u32 2139095040, %v4132_v20 }
 0x1fc   : > { %v2902_v44 = vadd.s32 4294967169, %v2343_v31  ;;  %vm1915_vm13 = vcmp.eq.s32.totalorder %v4147_v40, 0  ;;  %v1978_v12 = vmul.u32 %v4157_v32, %v1962_v3  ;;  %vm1980_vm14 = vc.u32 %v4195_v16, %v4189_v7 }
 0x1fd   : > { %v2730_v54 = vor.u32 4788187, %v2729_v17  ;;  %vm1918_vm15 = vcmp.eq.s32.totalorder %v4147_v40, 2  ;;  %v2744_v24 = vadd.s32 3, %v2740_v6  ;;  %v1982_v21 = vsel %vm1980_vm14, %v1981_v53, %v4190_v18 }
 0x1fe   : > { %v2349_v43 = vadd.s32 1, %v2902_v44  ;;  %v2733_v14 = vcvt.s32.f32 %v2726_v23  ;;  %v1983_v37 = vadd.s32 %v1982_v21, %v1978_v12  ;;  %v2346_v52 = vand.u32 8388607, %v2339_v1 }
 0x1ff   : > { %v3215_v60 = vpop.eup %3214  ;;  %v2731_v26 = vand.u32 2147483647, %v2730_v54  ;;  %v2135_v32 = vshrl.u32 %v2134_v33, 23  ;;  %vm1911_vm1 = vweird.f32 %v3911_v28  ;;  %vm1914_vm2 = vcmp.lt.s32.totalorder %v4147_v40, 2 }
 0x200   : > { %v3217_v39 = vpop.eup %3216  ;;  %v1919_v19 = vxor.u32 2147483648, %v3215_v60  ;;  %vm2350_vm0 = vcmp.gt.s32.totalorder %v2349_v43, 0  ;;  %v1984_v38 = vadd.s32 536870912, %v1983_v37  ;;  %v4225_v55 = vand.u32 3, %v2744_v24 }
 0x201   : > { %v1916_v0 = vxor.u32 2147483648, %v3217_v39  ;;  %v2734_v2 = vmul.f32 %v2733_v14, %v2731_v26  ;;  %v2351_v50 = vsel %vm2350_vm0, %v2349_v43, 0  ;;  %v2347_v10 = vor.u32 8388608, %v2346_v52 }
 0x202   : > { %v1920_v13 = vsel %vm1918_vm15, %v1919_v19, %v3217_v39  ;;  %v2353_v48 = vand.u32 31, %v2351_v50  ;;  %v4227_v5 = vshrl.u32 %v1984_v38, 30  ;;  %v2131_v59 = vand.u32 2147483647, %v4132_v20 }
 0x203   : > { %v1917_v15 = vsel %vm1915_vm13, %v3215_v60, %v1916_v0  ;;  %v2735_v25 = vxor.u32 2147483648, %v2734_v2  ;;  %v2894_v30 = vadd.s32 4294967169, %v2135_v32  ;;  %v1979_v53 = vadd.s32 %v4189_v7, %v4195_v16 }
 0x204   : > { %v1921_v35 = vsel %vm1914_vm2, %v1917_v15, %v1920_v13  ;;  %v2354_v58 = vsub.s32 32, %v2353_v48  ;;  %v1986_v18 = vshll.u32 %v4227_v5, 30  ;;  %v2356_v40 = vshll.u32 %v3328_v41, %v2353_v48 }
 0x205   : > { %v1922_v46 = vsel %vm1911_vm1, nan, %v1921_v35  ;;  %v2736_v28 = vsel %vm2653_vm6, %v2735_v25, %v2734_v2  ;;  %v2359_v3 = vshll.u32 %v3329_v45, %v2353_v48  ;;  %v2362_v17 = vshll.u32 %v3330_v47, %v2353_v48 }
 0x206   : > { %2758 = vst [vmem:[%s3934_s5 + $0x18] sm:$0xff] %v1922_v46  ;;  %v2739_v22 = vsel %vm4199_vm12, %v3974_v4, %v2736_v28  ;;  %v2357_v42 = vshrl.u32 %v3329_v45, %v2354_v58  ;;  %v2360_v31 = vshrl.u32 %v3330_v47, %v2354_v58  ;;  %v4241_v23 = vsub.s32 %v1983_v37, %v1986_v18 }
 0x207   : > { %3218 = vcosq.f32 %v2739_v22  ;;  %v2363_v6 = vshrl.u32 %v3331_v49, %v2354_v58  ;;  %v2352_v44 = vshrl.u32 %v2351_v50, 5  ;;  %v4247_v27 = vshll.u32 %v2347_v10, 8 }
 0x208   : > { %3220 = vsinq.f32 %v2739_v22  ;;  %v1989_v33 = vsub.s32 0, %v4241_v23  ;;  %v2358_v54 = vor.u32 %v2357_v42, %v2356_v40  ;;  %v2361_v12 = vor.u32 %v2360_v31, %v2359_v3 }
 0x209   : > { %v2364_v60 = vor.u32 %v2363_v6, %v2362_v17  ;;  %v2365_v24 = vshll.u32 %v3331_v49, %v2353_v48  ;;  %v2366_v21 = vshrl.u32 %v3332_v51, %v2354_v58  ;;  %v2368_v43 = vshll.u32 %v3332_v51, %v2353_v48 }
 0x20a   : > { %v2369_v39 = vshrl.u32 %v3333_v63, %v2354_v58  ;;  %vm2750_vm3 = vcmp.eq.s32.totalorder %v4225_v55, 2  ;;  %v2887_v7 = vmin.u32 %v1989_v33, %v4241_v23  ;;  %v2009_v16 = vsub.s32 4, %v4227_v5 }
 0x20b   : > { %v4259_v19 = vand.u32 8388607, %v2131_v59  ;;  %v2141_v26 = vadd.s32 1, %v2894_v30  ;;  %vm2747_vm4 = vcmp.eq.s32.totalorder %v4225_v55, 0  ;;  %v2355_v14 = vshrl.u32 %v3328_v41, %v2354_v58 }
 0x20c   : > { %v2367_v37 = vor.u32 %v2366_v21, %v2365_v24  ;;  %v2370_v0 = vor.u32 %v2369_v39, %v2368_v43  ;;  %vm2371_vm5 = vcmp.lt.s32.totalorder %v2352_v44, 1  ;;  %vm2746_vm6 = vcmp.lt.s32.totalorder %v4225_v55, 2 }
 0x20d   : > { %vm1925_vm7 = vcmp.lt.s32.totalorder %v3945_v8, 0  ;;  %v1991_v52 = vclz %v2887_v7  ;;  %vm2372_vm8 = vcmp.lt.s32.totalorder %v2352_v44, 2  ;;  %vm2373_vm9 = vcmp.lt.s32.totalorder %v2352_v44, 3 }
 0x20e   : > { %vm2374_vm10 = vcmp.lt.s32.totalorder %v2352_v44, 4  ;;  %vm2743_vm11 = vweird.f32 %v3974_v4  ;;  %v2379_v13 = vsel %vm2371_vm5, %v2358_v54, %v2361_v12  ;;  %v2383_v38 = vsel %vm2371_vm5, %v2361_v12, %v2364_v60 }
 0x20f   : > { %v2376_v32 = vsel %vm2374_vm10, %v2364_v60, 2102212464  ;;  %v2380_v2 = vsel %vm2374_vm10, %v2367_v37, 920167782  ;;  %v2888_v50 = vadd.s32 4294967294, %v1991_v52  ;;  %v2375_v15 = vsel %vm2371_vm5, %v2355_v14, %v2358_v54 }
 0x210   : > { %v2381_v48 = vsel %vm2373_vm9, %v2364_v60, %v2380_v2  ;;  %v2384_v35 = vsel %vm2374_vm10, %v2370_v0, 1326507024  ;;  %v2377_v25 = vsel %vm2373_vm9, %v2361_v12, %v2376_v32  ;;  %vm2142_vm12 = vcmp.gt.s32.totalorder %v2141_v26, 0 }
 0x211   : > { %v2382_v46 = vsel %vm2372_vm8, %v2379_v13, %v2381_v48  ;;  %v2385_v10 = vsel %vm2373_vm9, %v2367_v37, %v2384_v35  ;;  %v3219_v58 = vpop.eup %3218  ;;  %vm2889_vm13 = vcmp.lt.s32.totalorder %v2888_v50, 0  ;;  %v2378_v54 = vsel %vm2372_vm8, %v2375_v15, %v2377_v25 }
 0x212   : > { %v2386_v28 = vsel %vm2372_vm8, %v2383_v38, %v2385_v10  ;;  %v4269_v18 = vmul.u32.u64.low %v4247_v27, %v2382_v46  ;;  %v4270_v40 = vmul.u32.u64.high %v4247_v27, %v2382_v46, %v4269_v18  ;;  %v3221_v30 = vpop.eup %3220  ;;  %v2751_v22 = vxor.u32 2147483648, %v3219_v58 }
 0x213   : > { %v1994_v42 = vsel %vm2889_vm13, 0, %v2888_v50  ;;  %v4274_v3 = vmul.u32.u64.low %v4247_v27, %v2386_v28  ;;  %v4275_v31 = vmul.u32.u64.high %v4247_v27, %v2386_v28, %v4274_v3  ;;  %v2748_v17 = vxor.u32 2147483648, %v3221_v30 }
 0x214   : > { %v1995_v6 = vsub.s32 32, %v1994_v42  ;;  %v1999_v33 = vsub.s32 4294967266, %v1994_v42  ;;  %v2752_v12 = vsel %vm2750_vm3, %v2751_v22, %v3221_v30  ;;  %v1996_v60 = vshll.u32 %v4241_v23, %v1994_v42 }
 0x215   : > { %v2143_v24 = vsel %vm2142_vm12, %v2141_v26, 0  ;;  %v4284_v21 = vadd.f32 %v4206_v34, %v3804_v36  ;;  %v2749_v43 = vsel %vm2747_vm4, %v3219_v58, %v2748_v17  ;;  %v2397_v44 = vadd.s32 1, %v4270_v40 }
 0x216   : > { %v1997_v39 = vshrl.u32 %v1979_v53, %v1995_v6  ;;  %v2000_v7 = vadd.s32 127, %v1999_v33  ;;  %v2753_v14 = vsel %vm2746_vm6, %v2749_v43, %v2752_v12  ;;  %v2010_v23 = vsel %vm1925_vm7, %v2009_v16, %v4227_v5 }
 0x217   : > { %v2394_v26 = vmul.u32 %v4247_v27, %v2378_v54  ;;  %vm2396_vm14 = vc.u32 %v4275_v31, %v4269_v18  ;;  %v2754_v36 = vsel %vm2743_vm11, nan, %v2753_v14  ;;  %vm4303_vm15 = vcmp.le.f32.partialorder %v1923_v9, 0.7853982 }
 0x218   : > { %v1998_v34 = vor.u32 %v1997_v39, %v1996_v60  ;;  %v2001_v53 = vshll.u32 %v2000_v7, 23  ;;  %v2398_v37 = vsel %vm2396_vm14, %v2397_v44, %v4270_v40  ;;  %2766 = vst [vmem:[%s3934_s5 + $0x58] sm:$0xff] %v2754_v36  ;;  %v2145_v16 = vand.u32 31, %v2143_v24 }
 0x219   : > { %v2399_v5 = vadd.s32 %v2398_v37, %v2394_v26  ;;  %v2012_v0 = vsel %vm4303_vm15, 0, %v2010_v23  ;;  %v2139_v4 = vor.u32 8388608, %v4259_v19  ;;  %v4310_v13 = vshrl.u32 %v2143_v24, 5 }
 0x21a   : > { %v2002_v27 = vor.u32 4788187, %v2001_v53  ;;  %v2005_v52 = vcvt.s32.f32 %v1998_v34  ;;  %v2146_v2 = vsub.s32 32, %v2145_v16  ;;  %v2148_v50 = vshll.u32 %v3328_v41, %v2145_v16 }
 0x21b   : > { %v2400_v32 = vadd.s32 536870912, %v2399_v5  ;;  %v2151_v9 = vshll.u32 %v3329_v45, %v2145_v16  ;;  %v2154_v15 = vshll.u32 %v3330_v47, %v2145_v16  ;;  %v2157_v46 = vshll.u32 %v3331_v49, %v2145_v16 }
 0x21c   : > { %v2003_v38 = vand.u32 2147483647, %v2002_v27  ;;  %v2149_v35 = vshrl.u32 %v3329_v45, %v2146_v2  ;;  %v2152_v25 = vshrl.u32 %v3330_v47, %v2146_v2  ;;  %v2155_v10 = vshrl.u32 %v3331_v49, %v2146_v2 }
 0x21d   : > { %v2401_v48 = vshrl.u32 %v2400_v32, 30  ;;  %v2158_v58 = vshrl.u32 %v3332_v51, %v2146_v2  ;;  %v2161_v28 = vshrl.u32 %v3333_v63, %v2146_v2  ;;  %v4321_v42 = vshll.u32 %v2139_v4, 8 }
 0x21e   : > { %v2006_v19 = vmul.f32 %v2005_v52, %v2003_v38  ;;  %v2150_v30 = vor.u32 %v2149_v35, %v2148_v50  ;;  %v2153_v22 = vor.u32 %v2152_v25, %v2151_v9  ;;  %v2156_v17 = vor.u32 %v2155_v10, %v2154_v15 }
 0x21f   : > { %v2402_v40 = vshll.u32 %v2401_v48, 30  ;;  %v2159_v6 = vor.u32 %v2158_v58, %v2157_v46  ;;  %v2160_v33 = vshll.u32 %v3332_v51, %v2145_v16  ;;  %v2016_v54 = vadd.s32 3, %v2012_v0 }
 0x220   : > { %v2007_v3 = vxor.u32 2147483648, %v2006_v19  ;;  %vm2163_vm0 = vcmp.lt.s32.totalorder %v4310_v13, 1  ;;  %vm2166_vm1 = vcmp.lt.s32.totalorder %v4310_v13, 4  ;;  %vm2164_vm2 = vcmp.lt.s32.totalorder %v4310_v13, 2 }
 0x221   : > { %v4324_v12 = vsub.s32 %v2399_v5, %v2402_v40  ;;  %v2162_v24 = vor.u32 %v2161_v28, %v2160_v33  ;;  %v2171_v43 = vsel %vm2163_vm0, %v2150_v30, %v2153_v22  ;;  %v2172_v39 = vsel %vm2166_vm1, %v2159_v6, 920167782 }
 0x222   : > { %v2008_v60 = vsel %vm1925_vm7, %v2007_v3, %v2006_v19  ;;  %vm2165_vm3 = vcmp.lt.s32.totalorder %v4310_v13, 3  ;;  %v2425_v14 = vsub.s32 4, %v2401_v48  ;;  %v2147_v23 = vshrl.u32 %v3328_v41, %v2146_v2 }
 0x223   : > { %v2011_v7 = vsel %vm4303_vm15, %v3945_v8, %v2008_v60  ;;  %v2405_v44 = vsub.s32 0, %v4324_v12  ;;  %v2173_v26 = vsel %vm2165_vm3, %v2156_v17, %v2172_v39  ;;  %v2168_v34 = vsel %vm2166_vm1, %v2156_v17, 2102212464 }
 0x224   : > { %3222 = vcosq.f32 %v2011_v7  ;;  %v2174_v53 = vsel %vm2164_vm2, %v2171_v43, %v2173_v26  ;;  %v2175_v37 = vsel %vm2163_vm0, %v2153_v22, %v2156_v17  ;;  %v2176_v55 = vsel %vm2166_vm1, %v2162_v24, 1326507024 }
 0x225   : > { %3224 = vsinq.f32 %v2011_v7  ;;  %v2903_v36 = vmin.u32 %v2405_v44, %v4324_v12  ;;  %v4353_v5 = vmul.u32.u64.low %v4321_v42, %v2174_v53  ;;  %v4354_v16 = vmul.u32.u64.high %v4321_v42, %v2174_v53, %v4353_v5 }
 0x226   : > { %v3013_v27 = vadd.f32 %v3609_v61, %v3962_v11  ;;  %v2017_v0 = vand.u32 3, %v2016_v54  ;;  %v2167_v52 = vsel %vm2163_vm0, %v2147_v23, %v2150_v30  ;;  %v2169_v32 = vsel %vm2165_vm3, %v2153_v22, %v2168_v34 }
 0x227   : > { %v2407_v4 = vclz %v2903_v36  ;;  %v2177_v2 = vsel %vm2165_vm3, %v2159_v6, %v2176_v55  ;;  %v2238_v38 = vand.u32 2139095040, %v4284_v21  ;;  %vm2341_vm4 = vcmp.lt.s32.totalorder %v4152_v57, 0 }
 0x228   : > { %v2178_v9 = vsel %vm2164_vm2, %v2175_v37, %v2177_v2  ;;  %v4370_v61 = vadd.f32 %v3013_v27, %v3949_v29  ;;  %v3015_v15 = vadd.f32 %v3611_v62, %v3962_v11  ;;  %v2426_v35 = vsel %vm2341_vm4, %v2425_v14, %v2401_v48 }
 0x229   : > { %v2904_v50 = vadd.s32 4294967294, %v2407_v4  ;;  %v4377_v25 = vmul.u32.u64.low %v4321_v42, %v2178_v9  ;;  %v4378_v46 = vmul.u32.u64.high %v4321_v42, %v2178_v9, %v4377_v25  ;;  %vm2015_vm5 = vweird.f32 %v3945_v8 }
 0x22a   : > { %v2170_v19 = vsel %vm2164_vm2, %v2167_v52, %v2169_v32  ;;  %v2189_v10 = vadd.s32 1, %v4354_v16  ;;  %v2239_v29 = vshrl.u32 %v2238_v38, 23  ;;  %vm2018_vm7 = vcmp.lt.s32.totalorder %v2017_v0, 2 }
 0x22b   : > { %vm2905_vm6 = vcmp.lt.s32.totalorder %v2904_v50, 0  ;;  %vm4386_vm8 = vcmp.le.f32.partialorder %v2339_v1, 0.7853982  ;;  %v2395_v11 = vadd.s32 %v4269_v18, %v4275_v31  ;;  %v2186_v3 = vmul.u32 %v4321_v42, %v2170_v19 }
 0x22c   : > { %v2410_v48 = vsel %vm2905_vm6, 0, %v2904_v50  ;;  %v2428_v13 = vsel %vm4386_vm8, 0, %v2426_v35  ;;  %v2898_v40 = vadd.s32 4294967169, %v2239_v29  ;;  %vm2188_vm9 = vc.u32 %v4378_v46, %v4353_v5 }
 0x22d   : > { %v2411_v58 = vsub.s32 32, %v2410_v48  ;;  %v2415_v28 = vsub.s32 4294967266, %v2410_v48  ;;  %v2412_v22 = vshll.u32 %v4324_v12, %v2410_v48  ;;  %v2235_v1 = vand.u32 2147483647, %v4284_v21 }
 0x22e   : > { %v3223_v30 = vpop.eup %3222  ;;  %v2190_v33 = vsel %vm2188_vm9, %v2189_v10, %v4354_v16  ;;  %vm2022_vm10 = vcmp.eq.s32.totalorder %v2017_v0, 2  ;;  %v2245_v24 = vadd.s32 1, %v2898_v40  ;;  %vm2019_vm11 = vcmp.eq.s32.totalorder %v2017_v0, 0 }
 0x22f   : > { %v3225_v17 = vpop.eup %3224  ;;  %v2023_v6 = vxor.u32 2147483648, %v3223_v30  ;;  %v2413_v18 = vshrl.u32 %v2395_v11, %v2411_v58  ;;  %v2416_v31 = vadd.s32 127, %v2415_v28  ;;  %v2191_v60 = vadd.s32 %v2190_v33, %v2186_v3 }
 0x230   : > { %v2020_v54 = vxor.u32 2147483648, %v3225_v17  ;;  %v2432_v7 = vadd.s32 3, %v2428_v13  ;;  %vm2246_vm12 = vcmp.gt.s32.totalorder %v2245_v24, 0  ;;  %v2242_v26 = vand.u32 8388607, %v2235_v1 }
 0x231   : > { %v2024_v12 = vsel %vm2022_vm10, %v2023_v6, %v3225_v17  ;;  %v2414_v43 = vor.u32 %v2413_v18, %v2412_v22  ;;  %v2417_v42 = vshll.u32 %v2416_v31, 23  ;;  %v2192_v44 = vadd.s32 536870912, %v2191_v60 }
 0x232   : > { %v2021_v39 = vsel %vm2019_vm11, %v3223_v30, %v2020_v54  ;;  %v2247_v36 = vsel %vm2246_vm12, %v2245_v24, 0  ;;  %v2446_v55 = vand.u32 2139095040, %v4370_v61  ;;  %v4410_v4 = vadd.f32 %v3015_v15, %v4018_v56 }
 0x233   : > { %v2025_v14 = vsel %vm2018_vm7, %v2021_v39, %v2024_v12  ;;  %v2418_v23 = vor.u32 4788187, %v2417_v42  ;;  %v4405_v53 = vshrl.u32 %v2192_v44, 30  ;;  %v2249_v37 = vand.u32 31, %v2247_v36 }
 0x234   : > { %v2026_v34 = vsel %vm2015_vm5, nan, %v2025_v14  ;;  %v2421_v27 = vcvt.s32.f32 %v2414_v43  ;;  %v4413_v2 = vand.u32 3, %v2432_v7  ;;  %v2187_v8 = vadd.s32 %v4353_v5, %v4378_v46 }
 0x235   : > { %2759 = vst [vmem:[%s3934_s5 + $0x20] sm:$0xff] %v2026_v34  ;;  %v2419_v16 = vand.u32 2147483647, %v2418_v23  ;;  %v2194_v0 = vshll.u32 %v4405_v53, 30  ;;  %v2250_v52 = vsub.s32 32, %v2249_v37  ;;  %v2243_v9 = vor.u32 8388608, %v2242_v26 }
 0x236   : > { %v2443_v38 = vand.u32 2147483647, %v4370_v61  ;;  %v2447_v25 = vshrl.u32 %v2446_v55, 23  ;;  %v2252_v56 = vshll.u32 %v3328_v41, %v2249_v37  ;;  %v2255_v11 = vshll.u32 %v3329_v45, %v2249_v37 }
 0x237   : > { %v2422_v32 = vmul.f32 %v2421_v27, %v2419_v16  ;;  %v4418_v50 = vsub.s32 %v2191_v60, %v2194_v0  ;;  %v2253_v35 = vshrl.u32 %v3329_v45, %v2250_v52  ;;  %v2256_v15 = vshrl.u32 %v3330_v47, %v2250_v52 }
 0x238   : > { %v2259_v10 = vshrl.u32 %v3331_v49, %v2250_v52  ;;  %v2258_v5 = vshll.u32 %v3330_v47, %v2249_v37  ;;  %v2262_v46 = vshrl.u32 %v3332_v51, %v2250_v52  ;;  %v2248_v58 = vshrl.u32 %v2247_v36, 5 }
 0x239   : > { %v2423_v19 = vxor.u32 2147483648, %v2422_v32  ;;  %v2197_v29 = vsub.s32 0, %v4418_v50  ;;  %v2254_v28 = vor.u32 %v2253_v35, %v2252_v56  ;;  %v2261_v13 = vshll.u32 %v3331_v49, %v2249_v37 }
 0x23a   : > { %v2257_v22 = vor.u32 %v2256_v15, %v2255_v11  ;;  %v2260_v3 = vor.u32 %v2259_v10, %v2258_v5  ;;  %v2264_v6 = vshll.u32 %v3332_v51, %v2249_v37  ;;  %v2265_v18 = vshrl.u32 %v3333_v63, %v2250_v52 }
 0x23b   : > { %v2424_v48 = vsel %vm2341_vm4, %v2423_v19, %v2422_v32  ;;  %v2895_v30 = vmin.u32 %v2197_v29, %v4418_v50  ;;  %v2263_v17 = vor.u32 %v2262_v46, %v2261_v13  ;;  %v2283_v33 = vshll.u32 %v2243_v9, 8 }
 0x23c   : > { %v2427_v40 = vsel %vm4386_vm8, %v4152_v57, %v2424_v48  ;;  %v2906_v54 = vadd.s32 4294967169, %v2447_v25  ;;  %v2217_v60 = vsub.s32 4, %v4405_v53  ;;  %v2251_v24 = vshrl.u32 %v3328_v41, %v2250_v52 }
 0x23d   : > { %3226 = vcosq.f32 %v2427_v40  ;;  %v2199_v31 = vclz %v2895_v30  ;;  %v2266_v62 = vor.u32 %v2265_v18, %v2264_v6  ;;  %vm2267_vm13 = vcmp.lt.s32.totalorder %v2248_v58, 1 }
 0x23e   : > { %3228 = vsinq.f32 %v2427_v40  ;;  %vm2133_vm14 = vcmp.lt.s32.totalorder %v4132_v20, 0  ;;  %vm2269_vm15 = vcmp.lt.s32.totalorder %v2248_v58, 3  ;;  %vm2270_vm0 = vcmp.lt.s32.totalorder %v2248_v58, 4 }
 0x23f   : > { %v2896_v12 = vadd.s32 4294967294, %v2199_v31  ;;  %v2275_v43 = vsel %vm2267_vm13, %v2254_v28, %v2257_v22  ;;  %v2272_v42 = vsel %vm2270_vm0, %v2260_v3, 2102212464  ;;  %v2276_v39 = vsel %vm2270_vm0, %v2263_v17, 920167782 }
 0x240   : > { %v2279_v7 = vsel %vm2267_vm13, %v2257_v22, %v2260_v3  ;;  %v2280_v44 = vsel %vm2270_vm0, %v2266_v62, 1326507024  ;;  %vm2268_vm2 = vcmp.lt.s32.totalorder %v2248_v58, 2  ;;  %v2277_v14 = vsel %vm2269_vm15, %v2260_v3, %v2276_v39 }
 0x241   : > { %vm2897_vm1 = vcmp.lt.s32.totalorder %v2896_v12, 0  ;;  %v2281_v23 = vsel %vm2269_vm15, %v2263_v17, %v2280_v44  ;;  %v2271_v36 = vsel %vm2267_vm13, %v2251_v24, %v2254_v28  ;;  %v2278_v34 = vsel %vm2268_vm2, %v2275_v43, %v2277_v14 }
 0x242   : > { %v2202_v26 = vsel %vm2897_vm1, 0, %v2896_v12  ;;  %v2282_v37 = vsel %vm2268_vm2, %v2279_v7, %v2281_v23  ;;  %vm2431_vm3 = vweird.f32 %v4152_v57  ;;  %vm4447_vm4 = vcmp.le.f32.partialorder %v2131_v59, 0.7853982 }
 0x243   : > { %v2203_v16 = vsub.s32 32, %v2202_v26  ;;  %v2207_v27 = vsub.s32 4294967266, %v2202_v26  ;;  %v2273_v0 = vsel %vm2269_vm15, %v2257_v22, %v2272_v42  ;;  %v2453_v52 = vadd.s32 1, %v2906_v54 }
 0x244   : > { %v4452_v32 = vmul.u32.u64.low %v2283_v33, %v2282_v37  ;;  %v4453_v9 = vmul.u32.u64.high %v2283_v33, %v2282_v37, %v4452_v32  ;;  %v4455_v35 = vmul.u32.u64.low %v2283_v33, %v2278_v34  ;;  %v4456_v25 = vmul.u32.u64.high %v2283_v33, %v2278_v34, %v4455_v35 }
 0x245   : > { %v2204_v19 = vshll.u32 %v4418_v50, %v2202_v26  ;;  %v2205_v56 = vshrl.u32 %v2187_v8, %v2203_v16  ;;  %v2208_v15 = vadd.s32 127, %v2207_v27  ;;  %vm2454_vm5 = vcmp.gt.s32.totalorder %v2453_v52, 0 }
 0x246   : > { %vm2435_vm6 = vcmp.eq.s32.totalorder %v4413_v2, 0  ;;  %vm2438_vm7 = vcmp.eq.s32.totalorder %v4413_v2, 2  ;;  %v2274_v10 = vsel %vm2268_vm2, %v2271_v36, %v2273_v0  ;;  %v2455_v29 = vsel %vm2454_vm5, %v2453_v52, 0 }
 0x247   : > { %v3227_v59 = vpop.eup %3226  ;;  %v2206_v46 = vor.u32 %v2205_v56, %v2204_v19  ;;  %v2209_v48 = vshll.u32 %v2208_v15, 23  ;;  %v2450_v28 = vand.u32 8388607, %v2443_v38  ;;  %v2218_v8 = vsel %vm2133_vm14, %v2217_v60, %v4405_v53 }
 0x248   : > { %v3229_v11 = vpop.eup %3228  ;;  %v2439_v5 = vxor.u32 2147483648, %v3227_v59  ;;  %vm2292_vm8 = vc.u32 %v4453_v9, %v4455_v35  ;;  %v2293_v50 = vadd.s32 1, %v4456_v25  ;;  %v2290_v30 = vmul.u32 %v2283_v33, %v2274_v10 }
 0x249   : > { %v2436_v13 = vxor.u32 2147483648, %v3229_v11  ;;  %v2210_v40 = vor.u32 4788187, %v2209_v48  ;;  %v2457_v22 = vand.u32 31, %v2455_v29  ;;  %vm2434_vm9 = vcmp.lt.s32.totalorder %v4413_v2, 2 }
 0x24a   : > { %v2440_v58 = vsel %vm2438_vm7, %v2439_v5, %v3229_v11  ;;  %v2213_v17 = vcvt.s32.f32 %v2206_v46  ;;  %v2294_v6 = vsel %vm2292_vm8, %v2293_v50, %v4456_v25  ;;  %v2220_v24 = vsel %vm4447_vm4, 0, %v2218_v8 }
 0x24b   : > { %v2437_v3 = vsel %vm2435_vm6, %v3227_v59, %v2436_v13  ;;  %v2211_v53 = vand.u32 2147483647, %v2210_v40  ;;  %v2295_v31 = vadd.s32 %v2294_v6, %v2290_v30  ;;  %v2458_v54 = vsub.s32 32, %v2457_v22 }
 0x24c   : > { %v2441_v18 = vsel %vm2434_vm9, %v2437_v3, %v2440_v58  ;;  %v2451_v33 = vor.u32 8388608, %v2450_v28  ;;  %v2456_v62 = vshrl.u32 %v2455_v29, 5  ;;  %v2460_v2 = vshll.u32 %v3328_v41, %v2457_v22 }
 0x24d   : > { %v2442_v60 = vsel %vm2431_vm3, nan, %v2441_v18  ;;  %v2214_v12 = vmul.f32 %v2213_v17, %v2211_v53  ;;  %v2296_v43 = vadd.s32 536870912, %v2295_v31  ;;  %v2461_v42 = vshrl.u32 %v3329_v45, %v2458_v54 }
 0x24e   : > { %2763 = vst [vmem:[%s3934_s5 + $0x40] sm:$0xff] %v2442_v60  ;;  %v2463_v39 = vshll.u32 %v3329_v45, %v2457_v22  ;;  %v2464_v7 = vshrl.u32 %v3330_v47, %v2458_v54  ;;  %v2467_v44 = vshrl.u32 %v3331_v49, %v2458_v54  ;;  %v2470_v57 = vshrl.u32 %v3332_v51, %v2458_v54 }
 0x24f   : > { %v2215_v14 = vxor.u32 2147483648, %v2214_v12  ;;  %v4486_v23 = vshrl.u32 %v2296_v43, 30  ;;  %v2466_v26 = vshll.u32 %v3330_v47, %v2457_v22  ;;  %v2469_v36 = vshll.u32 %v3331_v49, %v2457_v22 }
 0x250   : > { %v2462_v34 = vor.u32 %v2461_v42, %v2460_v2  ;;  %v2465_v37 = vor.u32 %v2464_v7, %v2463_v39  ;;  %v2472_v16 = vshll.u32 %v3332_v51, %v2457_v22  ;;  %v2473_v27 = vshrl.u32 %v3333_v63, %v2458_v54 }
 0x251   : > { %v2216_v0 = vsel %vm2133_vm14, %v2215_v14, %v2214_v12  ;;  %v2298_v52 = vshll.u32 %v4486_v23, 30  ;;  %v2471_v32 = vor.u32 %v2470_v57, %v2469_v36  ;;  %v2224_v19 = vadd.s32 3, %v2220_v24 }
 0x252   : > { %v2219_v25 = vsel %vm4447_vm4, %v4132_v20, %v2216_v0  ;;  %v2468_v56 = vor.u32 %v2467_v44, %v2466_v26  ;;  %v2474_v15 = vor.u32 %v2473_v27, %v2472_v16  ;;  %vm2475_vm10 = vcmp.lt.s32.totalorder %v2456_v62, 1 }
 0x253   : > { %3230 = vcosq.f32 %v2219_v25  ;;  %v4498_v59 = vsub.s32 %v2295_v31, %v2298_v52  ;;  %v2491_v10 = vshll.u32 %v2451_v33, 8  ;;  %vm2478_vm11 = vcmp.lt.s32.totalorder %v2456_v62, 4 }
 0x254   : > { %3232 = vsinq.f32 %v2219_v25  ;;  %v2483_v29 = vsel %vm2475_vm10, %v2462_v34, %v2465_v37  ;;  %v2550_v11 = vand.u32 2139095040, %v4410_v4  ;;  %vm2476_vm12 = vcmp.lt.s32.totalorder %v2456_v62, 2 }
 0x255   : > { %v2301_v5 = vsub.s32 0, %v4498_v59  ;;  %vm2477_vm13 = vcmp.lt.s32.totalorder %v2456_v62, 3  ;;  %v2484_v55 = vsel %vm2478_vm11, %v2471_v32, 920167782  ;;  %v2480_v46 = vsel %vm2478_vm11, %v2468_v56, 2102212464 }
 0x256   : > { %v2485_v48 = vsel %vm2477_vm13, %v2468_v56, %v2484_v55  ;;  %v2487_v28 = vsel %vm2475_vm10, %v2465_v37, %v2468_v56  ;;  %v2488_v13 = vsel %vm2478_vm11, %v2474_v15, 1326507024  ;;  %v2459_v50 = vshrl.u32 %v3328_v41, %v2458_v54 }
 0x257   : > { %v2899_v8 = vmin.u32 %v2301_v5, %v4498_v59  ;;  %v2486_v58 = vsel %vm2476_vm12, %v2483_v29, %v2485_v48  ;;  %v2489_v40 = vsel %vm2477_vm13, %v2471_v32, %v2488_v13  ;;  %v2225_v30 = vand.u32 3, %v2224_v19 }
 0x258   : > { %v2490_v22 = vsel %vm2476_vm12, %v2487_v28, %v2489_v40  ;;  %v4508_v3 = vmul.u32.u64.low %v2491_v10, %v2486_v58  ;;  %v4509_v17 = vmul.u32.u64.high %v2491_v10, %v2486_v58, %v4508_v3  ;;  %v2479_v18 = vsel %vm2475_vm10, %v2459_v50, %v2462_v34 }
 0x259   : > { %v2303_v6 = vclz %v2899_v8  ;;  %v2481_v53 = vsel %vm2477_vm13, %v2465_v37, %v2480_v46  ;;  %v4513_v31 = vmul.u32.u64.low %v2491_v10, %v2490_v22  ;;  %v4514_v60 = vmul.u32.u64.high %v2491_v10, %v2490_v22, %v4513_v31 }
 0x25a   : > { %v2551_v24 = vshrl.u32 %v2550_v11, 23  ;;  %vm2237_vm14 = vcmp.lt.s32.totalorder %v4284_v21, 0  ;;  %vm2226_vm15 = vcmp.lt.s32.totalorder %v2225_v30, 2  ;;  %v2482_v33 = vsel %vm2476_vm12, %v2479_v18, %v2481_v53 }
 0x25b   : > { %v2900_v54 = vadd.s32 4294967294, %v2303_v6  ;;  %v2501_v12 = vadd.s32 1, %v4509_v17  ;;  %vm2227_vm0 = vcmp.eq.s32.totalorder %v2225_v30, 0  ;;  %vm2230_vm1 = vcmp.eq.s32.totalorder %v2225_v30, 2 }
 0x25c   : > { %v2910_v43 = vadd.s32 4294967169, %v2551_v24  ;;  %v2291_v42 = vadd.s32 %v4455_v35, %v4453_v9  ;;  %v2321_v57 = vsub.s32 4, %v4486_v23  ;;  %vm2500_vm3 = vc.u32 %v4514_v60, %v4508_v3 }
 0x25d   : > { %v3231_v2 = vpop.eup %3230  ;;  %vm2901_vm2 = vcmp.lt.s32.totalorder %v2900_v54, 0  ;;  %v2498_v36 = vmul.u32 %v2491_v10, %v2482_v33  ;;  %v2502_v16 = vsel %vm2500_vm3, %v2501_v12, %v4509_v17  ;;  %vm2223_vm4 = vweird.f32 %v4132_v20 }
 0x25e   : > { %v3233_v39 = vpop.eup %3232  ;;  %v2231_v7 = vxor.u32 2147483648, %v3231_v2  ;;  %v2306_v44 = vsel %vm2901_vm2, 0, %v2900_v54  ;;  %v2557_v9 = vadd.s32 1, %v2910_v43  ;;  %v2322_v25 = vsel %vm2237_vm14, %v2321_v57, %v4486_v23 }
 0x25f   : > { %v2228_v62 = vxor.u32 2147483648, %v3233_v39  ;;  %v2307_v14 = vsub.s32 32, %v2306_v44  ;;  %v2311_v26 = vsub.s32 4294967266, %v2306_v44  ;;  %v2308_v37 = vshll.u32 %v4498_v59, %v2306_v44 }
 0x260   : > { %v2232_v34 = vsel %vm2230_vm1, %v2231_v7, %v3233_v39  ;;  %v2503_v52 = vadd.s32 %v2502_v16, %v2498_v36  ;;  %vm2558_vm5 = vcmp.gt.s32.totalorder %v2557_v9, 0  ;;  %vm4535_vm6 = vcmp.le.f32.partialorder %v2235_v1, 0.7853982 }
 0x261   : > { %v2229_v35 = vsel %vm2227_vm0, %v3231_v2, %v2228_v62  ;;  %v2309_v27 = vshrl.u32 %v2291_v42, %v2307_v14  ;;  %v2312_v0 = vadd.s32 127, %v2311_v26  ;;  %v2559_v29 = vsel %vm2558_vm5, %v2557_v9, 0 }
 0x262   : > { %v2233_v32 = vsel %vm2226_vm15, %v2229_v35, %v2232_v34  ;;  %v2504_v59 = vadd.s32 536870912, %v2503_v52  ;;  %v2547_v5 = vand.u32 2147483647, %v4410_v4  ;;  %v2324_v23 = vsel %vm4535_vm6, 0, %v2322_v25 }
 0x263   : > { %v2234_v19 = vsel %vm2223_vm4, nan, %v2233_v32  ;;  %v2310_v56 = vor.u32 %v2309_v27, %v2308_v37  ;;  %v2313_v15 = vshll.u32 %v2312_v0, 23  ;;  %v2561_v55 = vand.u32 31, %v2559_v29 }
 0x264   : > { %2761 = vst [vmem:[%s3934_s5 + $0x30] sm:$0xff] %v2234_v19  ;;  %v4539_v11 = vshrl.u32 %v2504_v59, 30  ;;  %v2328_v1 = vadd.s32 3, %v2324_v23  ;;  %v2554_v58 = vand.u32 8388607, %v2547_v5  ;;  %v2560_v40 = vshrl.u32 %v2559_v29, 5 }
 0x265   : > { %v2314_v20 = vor.u32 4788187, %v2313_v15  ;;  %v2317_v48 = vcvt.s32.f32 %v2310_v56  ;;  %v2562_v13 = vsub.s32 32, %v2561_v55  ;;  %v2564_v30 = vshll.u32 %v3328_v41, %v2561_v55 }
 0x266   : > { %v2506_v28 = vshll.u32 %v4539_v11, 30  ;;  %v2567_v53 = vshll.u32 %v3329_v45, %v2561_v55  ;;  %v2570_v54 = vshll.u32 %v3330_v47, %v2561_v55  ;;  %v2573_v33 = vshll.u32 %v3331_v49, %v2561_v55 }
 0x267   : > { %v2315_v46 = vand.u32 2147483647, %v2314_v20  ;;  %v2565_v22 = vshrl.u32 %v3329_v45, %v2562_v13  ;;  %v2568_v17 = vshrl.u32 %v3330_v47, %v2562_v13  ;;  %v2571_v31 = vshrl.u32 %v3331_v49, %v2562_v13 }
 0x268   : > { %v2507_v50 = vsub.s32 %v2503_v52, %v2506_v28  ;;  %v2574_v12 = vshrl.u32 %v3332_v51, %v2562_v13  ;;  %v2576_v39 = vshll.u32 %v3332_v51, %v2561_v55  ;;  %v2577_v57 = vshrl.u32 %v3333_v63, %v2562_v13 }
 0x269   : > { %v2318_v8 = vmul.f32 %v2317_v48, %v2315_v46  ;;  %v2566_v24 = vor.u32 %v2565_v22, %v2564_v30  ;;  %v2569_v42 = vor.u32 %v2568_v17, %v2567_v53  ;;  %v2572_v7 = vor.u32 %v2571_v31, %v2570_v54 }
 0x26a   : > { %v2509_v18 = vsub.s32 0, %v2507_v50  ;;  %v2575_v44 = vor.u32 %v2574_v12, %v2573_v33  ;;  %v2499_v47 = vadd.s32 %v4508_v3, %v4514_v60  ;;  %v2555_v62 = vor.u32 8388608, %v2554_v58 }
 0x26b   : > { %v2319_v6 = vxor.u32 2147483648, %v2318_v8  ;;  %v2563_v14 = vshrl.u32 %v3328_v41, %v2562_v13  ;;  %v2578_v26 = vor.u32 %v2577_v57, %v2576_v39  ;;  %vm2579_vm7 = vcmp.lt.s32.totalorder %v2560_v40, 1 }
 0x26c   : > { %v2907_v2 = vmin.u32 %v2509_v18, %v2507_v50  ;;  %vm2581_vm8 = vcmp.lt.s32.totalorder %v2560_v40, 3  ;;  %vm2582_vm9 = vcmp.lt.s32.totalorder %v2560_v40, 4  ;;  %v2587_v36 = vsel %vm2579_vm7, %v2566_v24, %v2569_v42 }
 0x26d   : > { %v2320_v43 = vsel %vm2237_vm14, %v2319_v6, %v2318_v8  ;;  %v2584_v34 = vsel %vm2582_vm9, %v2572_v7, 2102212464  ;;  %v2588_v37 = vsel %vm2582_vm9, %v2575_v44, 920167782  ;;  %v2591_v63 = vsel %vm2579_vm7, %v2569_v42, %v2572_v7 }
 0x26e   : > { %v2323_v45 = vsel %vm4535_vm6, %v4284_v21, %v2320_v43  ;;  %v2511_v49 = vclz %v2907_v2  ;;  %v2592_v16 = vsel %vm2582_vm9, %v2578_v26, 1326507024  ;;  %vm2580_vm11 = vcmp.lt.s32.totalorder %v2560_v40, 2 }
 0x26f   : > { %3234 = vcosq.f32 %v2323_v45  ;;  %v2589_v3 = vsel %vm2581_vm8, %v2572_v7, %v2588_v37  ;;  %v2593_v60 = vsel %vm2581_vm8, %v2575_v44, %v2592_v16  ;;  %v2595_v27 = vshll.u32 %v2555_v62, 8 }
 0x270   : > { %3236 = vsinq.f32 %v2323_v45  ;;  %v2908_v51 = vadd.s32 4294967294, %v2511_v49  ;;  %v2590_v41 = vsel %vm2580_vm11, %v2587_v36, %v2589_v3  ;;  %v2594_v35 = vsel %vm2580_vm11, %v2591_v63, %v2593_v60 }
 0x271   : > { %v2583_v32 = vsel %vm2579_vm7, %v2563_v14, %v2566_v24  ;;  %v2585_v25 = vsel %vm2581_vm8, %v2569_v42, %v2584_v34  ;;  %v4573_v19 = vmul.u32.u64.low %v2595_v27, %v2594_v35  ;;  %v4574_v56 = vmul.u32.u64.high %v2595_v27, %v2594_v35, %v4573_v19 }
 0x272   : > { %vm2909_vm10 = vcmp.lt.s32.totalorder %v2908_v51, 0  ;;  %v4576_v15 = vmul.u32.u64.low %v2595_v27, %v2590_v41  ;;  %v4577_v59 = vmul.u32.u64.high %v2595_v27, %v2590_v41, %v4576_v15  ;;  %v2329_v10 = vand.u32 3, %v2328_v1 }
 0x273   : > { %v2514_v9 = vsel %vm2909_vm10, 0, %v2908_v51  ;;  %v2586_v55 = vsel %vm2580_vm11, %v2583_v32, %v2585_v25  ;;  %vm2327_vm0 = vweird.f32 %v4284_v21  ;;  %v2529_v24 = vsub.s32 4, %v4539_v11 }
 0x274   : > { %v2515_v0 = vsub.s32 32, %v2514_v9  ;;  %v2519_v52 = vsub.s32 4294967266, %v2514_v9  ;;  %v2516_v29 = vshll.u32 %v2507_v50, %v2514_v9  ;;  %vm2604_vm12 = vc.u32 %v4574_v56, %v4576_v15 }
 0x275   : > { %v2605_v58 = vadd.s32 1, %v4577_v59  ;;  %vm2334_vm13 = vcmp.eq.s32.totalorder %v2329_v10, 2  ;;  %v2602_v17 = vmul.u32 %v2595_v27, %v2586_v55  ;;  %vm2330_vm14 = vcmp.lt.s32.totalorder %v2329_v10, 2 }
 0x276   : > { %v2517_v20 = vshrl.u32 %v2499_v47, %v2515_v0  ;;  %v2520_v23 = vadd.s32 127, %v2519_v52  ;;  %vm2331_vm15 = vcmp.eq.s32.totalorder %v2329_v10, 0  ;;  %vm2445_vm1 = vcmp.lt.s32.totalorder %v4370_v61, 0 }
 0x277   : > { %v2606_v50 = vsel %vm2604_vm12, %v2605_v58, %v4577_v59  ;;  %v2530_v42 = vsel %vm2445_vm1, %v2529_v24, %v4539_v11  ;;  %vm2444_vm2 = vcmp.le.f32.partialorder %v2443_v38, 0.7853982  ;;  %v2603_v37 = vadd.s32 %v4576_v15, %v4574_v56 }
 0x278   : > { %v2518_v48 = vor.u32 %v2517_v20, %v2516_v29  ;;  %v2521_v28 = vshll.u32 %v2520_v23, 23  ;;  %v2607_v53 = vadd.s32 %v2606_v50, %v2602_v17  ;;  %v2532_v7 = vsel %vm2444_vm2, 0, %v2530_v42 }
 0x279   : > { %v3235_v46 = vpop.eup %3234  ;;  %v2536_v47 = vadd.s32 3, %v2532_v7  ;;  %vm2535_vm7 = vweird.f32 %v4370_v61  ;;  %vm2549_vm8 = vcmp.lt.s32.totalorder %v4410_v4, 0  ;;  %vm2548_vm9 = vcmp.le.f32.partialorder %v2547_v5, 0.7853982 }
 0x27a   : > { %v3237_v13 = vpop.eup %3236  ;;  %v2335_v8 = vxor.u32 2147483648, %v3235_v46  ;;  %v2522_v22 = vor.u32 4788187, %v2521_v28  ;;  %v2525_v18 = vcvt.s32.f32 %v2518_v48  ;;  %v2608_v12 = vadd.s32 536870912, %v2607_v53 }
 0x27b   : > { %v2332_v30 = vxor.u32 2147483648, %v3237_v13  ;;  %v2537_v14 = vand.u32 3, %v2536_v47 }
 0x27c   : > { %v2336_v1 = vsel %vm2334_vm13, %v2335_v8, %v3237_v13  ;;  %v2523_v6 = vand.u32 2147483647, %v2522_v22  ;;  %v2609_v2 = vshrl.u32 %v2608_v12, 30  ;;  %vm2639_vm13 = vweird.f32 %v4410_v4 }
 0x27d   : > { %v2333_v40 = vsel %vm2331_vm15, %v3235_v46, %v2332_v30  ;;  %vm2542_vm4 = vcmp.eq.s32.totalorder %v2537_v14, 2  ;;  %vm2538_vm5 = vcmp.lt.s32.totalorder %v2537_v14, 2  ;;  %vm2539_vm6 = vcmp.eq.s32.totalorder %v2537_v14, 0 }
 0x27e   : > { %v2337_v31 = vsel %vm2330_vm14, %v2333_v40, %v2336_v1  ;;  %v2526_v33 = vmul.f32 %v2525_v18, %v2523_v6  ;;  %v2610_v45 = vshll.u32 %v2609_v2, 30  ;;  %v2633_v15 = vsub.s32 4, %v2609_v2 }
 0x27f   : > { %v2338_v54 = vsel %vm2327_vm0, nan, %v2337_v31 }
 0x280   : > { %2762 = vst [vmem:[%s3934_s5 + $0x38] sm:$0xff] %v2338_v54  ;;  %v2527_v43 = vxor.u32 2147483648, %v2526_v33  ;;  %v2611_v44 = vsub.s32 %v2607_v53, %v2610_v45 }
 0x282   : > { %v2528_v39 = vsel %vm2445_vm1, %v2527_v43, %v2526_v33  ;;  %v2613_v57 = vsub.s32 0, %v2611_v44 }
 0x283   : > { %v2531_v21 = vsel %vm2444_vm2, %v4370_v61, %v2528_v39  ;;  %v2634_v61 = vsel %vm2549_vm8, %v2633_v15, %v2609_v2 }
 0x284   : > { %3238 = vcosq.f32 %v2531_v21  ;;  %v2911_v49 = vmin.u32 %v2613_v57, %v2611_v44  ;;  %v2636_v23 = vsel %vm2548_vm9, 0, %v2634_v61 }
 0x285   : > { %3240 = vsinq.f32 %v2531_v21  ;;  %v2640_v55 = vadd.s32 3, %v2636_v23 }
 0x286   : > { %v2615_v62 = vclz %v2911_v49 }
 0x287   : > { %v2641_v46 = vand.u32 3, %v2640_v55 }
 0x288   : > { %v2912_v26 = vadd.s32 4294967294, %v2615_v62 }
 0x289   : > { %vm2646_vm10 = vcmp.eq.s32.totalorder %v2641_v46, 2  ;;  %vm2643_vm11 = vcmp.eq.s32.totalorder %v2641_v46, 0  ;;  %vm2642_vm12 = vcmp.lt.s32.totalorder %v2641_v46, 2 }
 0x28a   : > { %vm2913_vm3 = vcmp.lt.s32.totalorder %v2912_v26, 0 }
 0x28b   : > { %v2618_v38 = vsel %vm2913_vm3, 0, %v2912_v26 }
 0x28c   : > { %v2619_v63 = vsub.s32 32, %v2618_v38  ;;  %v2623_v16 = vsub.s32 4294967266, %v2618_v38  ;;  %v2620_v9 = vshll.u32 %v2611_v44, %v2618_v38 }
 0x28e   : > { %v3239_v51 = vpop.eup %3238  ;;  %v2621_v41 = vshrl.u32 %v2603_v37, %v2619_v63  ;;  %v2624_v35 = vadd.s32 127, %v2623_v16 }
 0x28f   : > { %v3241_v11 = vpop.eup %3240  ;;  %v2543_v36 = vxor.u32 2147483648, %v3239_v51 }
 0x290   : > { %v2540_v34 = vxor.u32 2147483648, %v3241_v11  ;;  %v2622_v52 = vor.u32 %v2621_v41, %v2620_v9  ;;  %v2625_v32 = vshll.u32 %v2624_v35, 23 }
 0x291   : > { %v2544_v3 = vsel %vm2542_vm4, %v2543_v36, %v3241_v11 }
 0x292   : > { %v2541_v60 = vsel %vm2539_vm6, %v3239_v51, %v2540_v34  ;;  %v2626_v25 = vor.u32 4788187, %v2625_v32  ;;  %v2629_v59 = vcvt.s32.f32 %v2622_v52 }
 0x293   : > { %v2545_v27 = vsel %vm2538_vm5, %v2541_v60, %v2544_v3 }
 0x294   : > { %v2546_v0 = vsel %vm2535_vm7, nan, %v2545_v27  ;;  %v2627_v19 = vand.u32 2147483647, %v2626_v25 }
 0x295   : > { %2764 = vst [vmem:[%s3934_s5 + $0x48] sm:$0xff] %v2546_v0 }
 0x296   : > { %v2630_v56 = vmul.f32 %v2629_v59, %v2627_v19 }
 0x298   : > { %v2631_v10 = vxor.u32 2147483648, %v2630_v56 }
 0x29a   : > { %v2632_v29 = vsel %vm2549_vm8, %v2631_v10, %v2630_v56 }
 0x29b   : > { %v2635_v20 = vsel %vm2548_vm9, %v4410_v4, %v2632_v29 }
 0x29c   : > { %3242 = vcosq.f32 %v2635_v20 }
 0x29d   : > { %3244 = vsinq.f32 %v2635_v20 }
 0x2a6   : > { %v3243_v48 = vpop.eup %3242 }
 0x2a7   : > { %v3245_v28 = vpop.eup %3244  ;;  %v2647_v13 = vxor.u32 2147483648, %v3243_v48 }
 0x2a8   : > { %v2644_v8 = vxor.u32 2147483648, %v3245_v28 }
 0x2a9   : > { %v2648_v5 = vsel %vm2646_vm10, %v2647_v13, %v3245_v28 }
 0x2aa   : > { %v2645_v58 = vsel %vm2643_vm11, %v3243_v48, %v2644_v8 }
 0x2ab   : > { %v2649_v30 = vsel %vm2642_vm12, %v2645_v58, %v2648_v5 }
 0x2ac   : > { %v2650_v22 = vsel %vm2639_vm13, nan, %v2649_v30 }
 0x2ad   : > { %2765 = vst [vmem:[%s3934_s5 + $0x50] sm:$0xff] %v2650_v22 }
 0x2ae   : > { %3259 = shalt.err (!%p3256_p5)
}
 0x2af   : > { %s3260_s23 = scalar_lea.hbm %s4606_s15, 1536  ;;  %s3264_s28 = scalar_lea.hbm %s4660_s3, 3072 }
 0x2b0   : > { %p3261_p6 = scmp.ne.s32.totalorder %s4606_s15, %s3260_s23  ;;  %p3265_p10 = scmp.lt.u32.totalorder %s4606_s15, %s4660_s3 }
 0x2b1   : > { %p3266_p11 = scmp.lt.u32.totalorder %s3264_s28, %s3260_s23  ;;  %p3268_p13 = scmp.lt.u32.totalorder %s3260_s23, %s4606_s15 }
 0x2b2   : > { %p3262_p7 = pnand %p3261_p6, %p3397_p4 }
 0x2b3   : > { %p3267_p12 = por %p3266_p11, %p3265_p10 }
 0x2b4   : > { %p3263_p9 = pneg %p3262_p7 }
 0x2b5   : > { %p3269_p0 = por %p3268_p13, %p3267_p12 }
 0x2b7   : > { %p3270_p1 = pnand %p3269_p0, %p3263_p9 }
 0x2b9   : > { %3273 = shalt.err (!%p3270_p1)
}
 0x2ba   : > { %s3335_s4 = smov 384   ;;  %s3336_s5 = smov 24  }
 0x2bb   : > { %3124 = dma.vmem_to_hbm [thread:$0]  (%p3397_p4), %s4600_s7, 1536, %s4606_s15, %s4611_s10, %s3335_s4, %s3335_s4, %s3336_s5  }
 0x2bc PF: > { %p3130_p2 = scmp.ge.s32.totalorder %s3324_s17, 2  ;;  %s2798_s6 = sand.u32 1, %s3304_s12  }
 0x2bd   : > { %s2799_s8 = scalar_lea.sflag [#allocation3], %s2798_s6 }
 0x2be   : > { %p3127_p3 = pnand %p3130_p2, %p3404_p8 }
 0x2c0   : > { %3299 = dma.done.wait (!%p3127_p3), %s2799_s8, 1536  }
 0x2c1   : > { %3301 = vsyncadd (!%p3127_p3), %s2799_s8, 4294965760  ;;  %s16_s17 = sadd.s32 1, %s3324_s17   ;;  %s4683_s12 = smov %s3308_s13 }
 0x2c2   : > { %p13_p5 = scmp.ge.s32.totalorder %s16_s17, 4   ;;  %s4684_s13 = smov %s3312_s14 }
 0x2c3   : > { %s4685_s14 = smov %s3410_s25  ;;  %s4686_s15 = smov %s3320_s16 }
 0x2c4   : > { %s4687_s16 = smov %s4689_s20  ;;  %15 = sbr.rel (!%p13_p5) target bundleno = 4 (0x4), region = 67 }
 0x2cb   :  { %2804 = vsyncpa [#allocation3], 1 }
 0x2cc   :  { %2806 = vsyncpa [#allocation3 + $0x1], 1 }

</bundles_post_ra>
